<compile_context>
chip_gen: v6e
topology: v6e:2x2x1
jax: 0.10.0
libtpu: 0.0.40
codegen_flags: <defaults>
</compile_context>

<pallas_src>
import jax
import jax.numpy as jnp
import numpy as np
from jax.experimental import pallas as pl
from jax.experimental.pallas import tpu as pltpu


# ---------------------------------------------------------------------------
# fused decoder kernel: attention + context + multi-layer GRU (wavefront)
# ---------------------------------------------------------------------------
def _make_decoder_kernel(L, S, T, B, H):
    G = 3 * H

    def kernel(*refs):
        it = iter(refs)
        enc_ref = next(it)   # (B, S, 2H)  encoder states (batch-major, S on lanes-adjacent axis)
        x_ref = next(it)     # (T*B, H)    comb_proj_x_t flattened (wrapper-side free view)
        h0_ref = next(it)    # (L, B, H)   initial hidden
        we_ref = next(it)    # (1, 3H)     energy weight [hidden part | encoder part]
        be_ref = next(it)    # (1,)        energy bias (SMEM scalar)
        layer_refs = [tuple(next(it) for _ in range(3)) for _ in range(L)]
        out_ref = next(it)   # (T, B, H)   last-layer outputs
        hn_ref = next(it)    # (L, B, H)   final hidden per layer

        enc = enc_ref[...]                                   # (B, S, 2H)
        h0 = h0_ref[...]                                     # (L, B, H)
        w_e = we_ref[...]                                    # (1, 3H)
        w_eh = w_e[:, :H]                                    # (1, H)
        w_ee = w_e[:, H:]                                    # (1, 2H)
        b_e = be_ref[0]                                      # scalar from SMEM

        # ---- attention: scores laid out (B, S), S lane-dense -----------------
        enc_sc = jnp.sum(enc * w_ee[None, :, :], axis=-1)    # (B, S)
        # hidden.repeat(S//L,1,1) => score column s uses layer (s % L)
        hp_cols = [jnp.sum(h0[l] * w_eh, axis=-1, keepdims=True) for l in range(L)]
        hp_bl = jnp.concatenate(hp_cols, axis=1)             # (B, L)
        hid_sc = jnp.concatenate([hp_bl] * (S // L), axis=1)  # (B, S)
        e = jnp.maximum(enc_sc + hid_sc + b_e, 0.0)          # ReLU
        e_max = jnp.max(e, axis=-1, keepdims=True)
        p = jnp.exp(e - e_max)
        att = p * pl.reciprocal(jnp.sum(p, axis=-1, keepdims=True), approx=True)
        context = jnp.sum(att[:, :, None] * enc, axis=1)     # (B, 2H)

        # ---- load fused GRU params once (VMEM-resident values) --------------
        W_i, W_h, b_x, b_hn = [], [], [], []
        for l in range(L):
            wi_ref, wh_ref, bp_ref = layer_refs[l]
            W_i.append(wi_ref[...] if l > 0 else None)        # layer 0 via hoisted GX
            W_h.append(wh_ref[...])                           # (H, 3H)
            bp = bp_ref[...]                                  # (2, 3H)
            b_x.append(bp[0:1, :])                            # (1,3H) [b_ir+b_hr|b_iz+b_hz|b_in]
            b_hn.append(bp[1:2, 2 * H:])                      # (1, H)

        # ---- hoist layer-0 input-side matmul (off the recurrence chain) -----
        wi0_ref = layer_refs[0][0]                            # (3H, 3H): rows [0:2H]=ctx, [2H:]=x
        gx_x = jnp.dot(x_ref[...], wi0_ref[2 * H:, :],
                       preferred_element_type=jnp.float32)    # (T*B, 3H)
        g_ctx = jnp.dot(context, wi0_ref[:2 * H, :],
                        preferred_element_type=jnp.float32) + b_x[0]   # (B, 3H)
        # split once, before the recurrence (independent extracts, hidden by sched)
        gx0 = [gx_x[t * B:(t + 1) * B, :] + g_ctx for t in range(T)]

        # ---- layer/time wavefront recurrence (statically unrolled) ----------
        h_cur = [h0[l] for l in range(L)]
        y = [[None] * T for _ in range(L)]
        for s in range(T + L - 1):
            for l in range(L):
                t = s - l
                if t < 0 or t >= T:
                    continue
                if l == 0:
                    gx = gx0[t]                                          # biases folded
                else:
                    gx = jnp.dot(y[l - 1][t], W_i[l],
                                 preferred_element_type=jnp.float32) + b_x[l]
                h_prev = h_cur[l]
                gh = jnp.dot(h_prev, W_h[l], preferred_element_type=jnp.float32)
                rz = jax.nn.sigmoid(gx[:, :2 * H] + gh[:, :2 * H])       # (B, 2H)
                r = rz[:, :H]
                z = rz[:, H:]
                n = jnp.tanh(gx[:, 2 * H:] + r * (gh[:, 2 * H:] + b_hn[l]))
                h_new = n + z * (h_prev - n)                              # (1-z)*n + z*h
                h_cur[l] = h_new
                y[l][t] = h_new

        # one store per output array (no masked per-step stores)
        out_ref[...] = jnp.stack(y[L - 1], axis=0)            # (T, B, H)
        hn_ref[...] = jnp.stack(h_cur, axis=0)                 # (L, B, H)

    return kernel


# ---------------------------------------------------------------------------
# wrapper: layout plumbing + parameter packing + pallas_call
# ---------------------------------------------------------------------------
def gru_decoder_forward(encoder_states, comb_proj_x_t, hidden, params):
    """Pallas forward matching GRUDecoder.forward -> (outputs, hidden)."""
    S, B, twoH = encoder_states.shape
    T = comb_proj_x_t.shape[0]
    L, _, H = hidden.shape
    assert twoH == 2 * H and S % L == 0
    G = 3 * H
    f32 = jnp.float32

    # Layout plumbing only (no compute hoisted out of the kernel):
    enc_bt = jnp.transpose(encoder_states.astype(f32), (1, 0, 2))   # (B, S, 2H)
    x2d = comb_proj_x_t.astype(f32).reshape(T * B, H)               # free view

    args = [enc_bt, x2d, hidden.astype(f32),
            params["w_energy"].astype(f32).reshape(1, G),
            params["b_energy"].astype(f32).reshape(1,)]

    # One-time parameter packing: fused gate weights + (2,3H) bias pack per layer.
    for l in range(L):
        (w_ir, w_iz, w_in_, w_hr, w_hz, w_hn,
         b_ir, b_iz, b_in_, b_hr, b_hz, b_hn) = [a.astype(f32) for a in params["gru"][l]]
        w_i = jnp.concatenate([w_ir, w_iz, w_in_], axis=1)                     # (in_l, 3H)
        w_h = jnp.concatenate([w_hr, w_hz, w_hn], axis=1)                      # (H, 3H)
        b_row0 = jnp.concatenate([b_ir + b_hr, b_iz + b_hz, b_in_], axis=1)    # (1, 3H)
        b_row1 = jnp.concatenate([jnp.zeros((1, 2 * H), f32), b_hn], axis=1)   # (1, 3H)
        args.extend([w_i, w_h, jnp.concatenate([b_row0, b_row1], axis=0)])

    def full_spec(shape):
        nd = len(shape)
        return pl.BlockSpec(shape, lambda *_, _nd=nd: (0,) * _nd)

    in_specs = []
    for i, a in enumerate(args):
        if i == 4:  # scalar energy bias -> SMEM
            in_specs.append(pl.BlockSpec(memory_space=pltpu.MemorySpace.SMEM))
        else:
            in_specs.append(full_spec(a.shape))

    kernel = _make_decoder_kernel(L, S, T, B, H)
    outputs, hidden_out = pl.pallas_call(
        kernel,
        grid=(1,),
        in_specs=in_specs,
        out_specs=(full_spec((T, B, H)), full_spec((L, B, H))),
        out_shape=(jax.ShapeDtypeStruct((T, B, H), f32),
                   jax.ShapeDtypeStruct((L, B, H), f32)),
        compiler_params=pltpu.CompilerParams(
            dimension_semantics=("arbitrary",)),
    )(*args)
    return outputs, hidden_out


# ---------------------------------------------------------------------------
# pure-JAX reference (PyTorch semantics, per-gate parameter layout)
# ---------------------------------------------------------------------------
def ref_forward(enc, x, h0, params):
    S, B, twoH = enc.shape
    L, _, H = h0.shape
    T = x.shape[0]

    h_reshape = jnp.tile(h0, (S // L, 1, 1))                          # (S,B,H)
    cat = jnp.concatenate([h_reshape, enc], axis=2)                   # (S,B,3H)
    e = jax.nn.relu(jnp.einsum("sbk,k->sb", cat, params["w_energy"])
                    + params["b_energy"])
    att = jax.nn.softmax(e, axis=0)                                   # (S,B)
    context = jnp.einsum("sb,sbk->bk", att, enc)                      # (B,2H)
    gin = jnp.concatenate(
        [jnp.broadcast_to(context[None], (T, B, 2 * H)), x], axis=2)  # (T,B,3H)

    layer_in = gin
    h_final = []
    for l in range(L):
        (w_ir, w_iz, w_in_, w_hr, w_hz, w_hn,
         b_ir, b_iz, b_in_, b_hr, b_hz, b_hn) = params["gru"][l]
        h = h0[l]
        outs = []
        for t in range(T):
            xt = layer_in[t]
            r = jax.nn.sigmoid(xt @ w_ir + b_ir + h @ w_hr + b_hr)
            z = jax.nn.sigmoid(xt @ w_iz + b_iz + h @ w_hz + b_hz)
            n = jnp.tanh(xt @ w_in_ + b_in_ + r * (h @ w_hn + b_hn))
            h = (1.0 - z) * n + z * h
            outs.append(h)
        layer_in = jnp.stack(outs, axis=0)
        h_final.append(h)
    return layer_in, jnp.stack(h_final, axis=0)


# ---------------------------------------------------------------------------
# main
# ---------------------------------------------------------------------------
if __name__ == "__main__":
    B = 2
    H = 32          # args.hidden_dim
    n_layers = 2    # args.n_layers
    S = 8           # encoder sequence length (multiple of n_layers)
    T = 8           # decoder sequence length (comb_proj_x_t.size(0))

    key = jax.random.PRNGKey(0)
    ks = iter(jax.random.split(key, 64))

    def rnd(shape, scale=0.1):
        return (scale * jax.random.normal(next(ks), shape)).astype(jnp.float32)

    params = {
        # energy = Linear(3H, 1): weight laid out [hidden part | encoder part]
        "w_energy": rnd((3 * H,)),
        "b_energy": rnd(()),
        "gru": [],
    }
    for l in range(n_layers):
        in_l = 3 * H if l == 0 else H   # layer 0 input = context(2H) + x(H)
        params["gru"].append((
            rnd((in_l, H)), rnd((in_l, H)), rnd((in_l, H)),   # W_ir, W_iz, W_in
            rnd((H, H)), rnd((H, H)), rnd((H, H)),            # W_hr, W_hz, W_hn
            rnd((1, H)), rnd((1, H)), rnd((1, H)),            # b_ir, b_iz, b_in
            rnd((1, H)), rnd((1, H)), rnd((1, H)),            # b_hr, b_hz, b_hn
        ))

    encoder_states = rnd((S, B, 2 * H), scale=1.0)
    comb_proj_x_t = rnd((T, B, H), scale=1.0)
    hidden = rnd((n_layers, B, H), scale=1.0)

    outputs, hidden_out = gru_decoder_forward(
        encoder_states, comb_proj_x_t, hidden, params)
    outputs = jax.block_until_ready(outputs)
    hidden_out = jax.block_until_ready(hidden_out)

    ref_out, ref_hid = ref_forward(encoder_states, comb_proj_x_t, hidden, params)
    ref_out = jax.block_until_ready(ref_out)
    ref_hid = jax.block_until_ready(ref_hid)

    # slightly wider atol than pure-f32 to cover the approx EUP reciprocal in softmax
    np.testing.assert_allclose(np.asarray(outputs), np.asarray(ref_out),
                               rtol=2e-2, atol=5e-3)
    np.testing.assert_allclose(np.asarray(hidden_out), np.asarray(ref_hid),
                               rtol=2e-2, atol=5e-3)

    assert outputs.shape == (T, B, H)
    assert hidden_out.shape == (n_layers, B, H)
    print("KERNEL_OK")
</pallas_src>

<mosaic_0001>
module attributes {stable_mosaic.version = 11 : i64} {
  func.func @kernel(%arg0: i32, %arg1: memref<2x8x64xf32, #tpu.memory_space<vmem>>, %arg2: memref<16x32xf32, #tpu.memory_space<vmem>>, %arg3: memref<2x2x32xf32, #tpu.memory_space<vmem>>, %arg4: memref<1x96xf32, #tpu.memory_space<vmem>>, %arg5: memref<1xf32, #tpu.memory_space<smem>>, %arg6: memref<96x96xf32, #tpu.memory_space<vmem>>, %arg7: memref<32x96xf32, #tpu.memory_space<vmem>>, %arg8: memref<2x96xf32, #tpu.memory_space<vmem>>, %arg9: memref<32x96xf32, #tpu.memory_space<vmem>>, %arg10: memref<32x96xf32, #tpu.memory_space<vmem>>, %arg11: memref<2x96xf32, #tpu.memory_space<vmem>>, %arg12: memref<8x2x32xf32, #tpu.memory_space<vmem>>, %arg13: memref<2x2x32xf32, #tpu.memory_space<vmem>>) attributes {dimension_semantics = [#tpu.dimension_semantics<arbitrary>], iteration_bounds = array<i64: 1>, scalar_prefetch = 0 : i64, scratch_operands = 0 : i64, tpu.core_type = #tpu.core_type<tc>, window_params = [{pipeline_mode = #tpu.pipeline_mode<synchronous>, transform_indices = @transform_0, window_bounds = array<i64: 2, 8, 64>}, {pipeline_mode = #tpu.pipeline_mode<synchronous>, transform_indices = @transform_1, window_bounds = array<i64: 16, 32>}, {pipeline_mode = #tpu.pipeline_mode<synchronous>, transform_indices = @transform_2, window_bounds = array<i64: 2, 2, 32>}, {pipeline_mode = #tpu.pipeline_mode<synchronous>, transform_indices = @transform_3, window_bounds = array<i64: 1, 96>}, {transform_indices = @transform_4, window_bounds = array<i64: 1>}, {pipeline_mode = #tpu.pipeline_mode<synchronous>, transform_indices = @transform_5, window_bounds = array<i64: 96, 96>}, {pipeline_mode = #tpu.pipeline_mode<synchronous>, transform_indices = @transform_6, window_bounds = array<i64: 32, 96>}, {pipeline_mode = #tpu.pipeline_mode<synchronous>, transform_indices = @transform_7, window_bounds = array<i64: 2, 96>}, {pipeline_mode = #tpu.pipeline_mode<synchronous>, transform_indices = @transform_8, window_bounds = array<i64: 32, 96>}, {pipeline_mode = #tpu.pipeline_mode<synchronous>, transform_indices = @transform_9, window_bounds = array<i64: 32, 96>}, {pipeline_mode = #tpu.pipeline_mode<synchronous>, transform_indices = @transform_10, window_bounds = array<i64: 2, 96>}, {pipeline_mode = #tpu.pipeline_mode<synchronous>, transform_indices = @transform_11, window_bounds = array<i64: 8, 2, 32>}, {pipeline_mode = #tpu.pipeline_mode<synchronous>, transform_indices = @transform_12, window_bounds = array<i64: 2, 2, 32>}]} {
    %c0 = arith.constant 0 : index
    %c0_0 = arith.constant 0 : index
    %c0_1 = arith.constant 0 : index
    %0 = vector.load %arg1[%c0, %c0_0, %c0_1] : memref<2x8x64xf32, #tpu.memory_space<vmem>>, vector<2x8x64xf32>
    %c0_2 = arith.constant 0 : index
    %c0_3 = arith.constant 0 : index
    %c0_4 = arith.constant 0 : index
    %1 = vector.load %arg3[%c0_2, %c0_3, %c0_4] : memref<2x2x32xf32, #tpu.memory_space<vmem>>, vector<2x2x32xf32>
    %c0_5 = arith.constant 0 : index
    %c0_6 = arith.constant 0 : index
    %2 = vector.load %arg4[%c0_5, %c0_6] : memref<1x96xf32, #tpu.memory_space<vmem>>, vector<1x96xf32>
    %3 = vector.extract_strided_slice %2 {offsets = [0, 0], sizes = [1, 32], strides = [1, 1]} : vector<1x96xf32> to vector<1x32xf32>
    %4 = vector.extract_strided_slice %2 {offsets = [0, 32], sizes = [1, 64], strides = [1, 1]} : vector<1x96xf32> to vector<1x64xf32>
    %c0_7 = arith.constant 0 : index
    %5 = memref.load %arg5[%c0_7] : memref<1xf32, #tpu.memory_space<smem>>
    %6 = vector.shape_cast %4 : vector<1x64xf32> to vector<1x1x64xf32>
    %7 = vector.broadcast %6 : vector<1x1x64xf32> to vector<2x8x64xf32>
    %8 = arith.mulf %0, %7 : vector<2x8x64xf32>
    %cst = arith.constant dense<0.000000e+00> : vector<2x8xf32>
    %9 = vector.multi_reduction <add>, %8, %cst [2] : vector<2x8x64xf32> to vector<2x8xf32>
    %10 = vector.extract_strided_slice %1 {offsets = [0, 0, 0], sizes = [1, 2, 32], strides = [1, 1, 1]} : vector<2x2x32xf32> to vector<1x2x32xf32>
    %11 = vector.shape_cast %10 : vector<1x2x32xf32> to vector<2x32xf32>
    %12 = vector.broadcast %3 : vector<1x32xf32> to vector<2x32xf32>
    %13 = arith.mulf %11, %12 : vector<2x32xf32>
    %cst_8 = arith.constant dense<0.000000e+00> : vector<2xf32>
    %14 = vector.multi_reduction <add>, %13, %cst_8 [1] : vector<2x32xf32> to vector<2xf32>
    %15 = vector.shape_cast %14 : vector<2xf32> to vector<2x1xf32>
    %16 = vector.extract_strided_slice %1 {offsets = [1, 0, 0], sizes = [1, 2, 32], strides = [1, 1, 1]} : vector<2x2x32xf32> to vector<1x2x32xf32>
    %17 = vector.shape_cast %16 : vector<1x2x32xf32> to vector<2x32xf32>
    %18 = vector.broadcast %3 : vector<1x32xf32> to vector<2x32xf32>
    %19 = arith.mulf %17, %18 : vector<2x32xf32>
    %cst_9 = arith.constant dense<0.000000e+00> : vector<2xf32>
    %20 = vector.multi_reduction <add>, %19, %cst_9 [1] : vector<2x32xf32> to vector<2xf32>
    %21 = vector.shape_cast %20 : vector<2xf32> to vector<2x1xf32>
    %22 = tpu.concatenate %15, %21 in 1 : vector<2x1xf32>, vector<2x1xf32> -> vector<2x2xf32>
    %23 = tpu.concatenate %22, %22, %22, %22 in 1 : vector<2x2xf32>, vector<2x2xf32>, vector<2x2xf32>, vector<2x2xf32> -> vector<2x8xf32>
    %24 = arith.addf %9, %23 : vector<2x8xf32>
    %25 = vector.broadcast %5 : f32 to vector<2x8xf32>
    %26 = arith.addf %24, %25 : vector<2x8xf32>
    %cst_10 = arith.constant 0.000000e+00 : f32
    %27 = vector.broadcast %cst_10 : f32 to vector<2x8xf32>
    %28 = arith.maximumf %26, %27 : vector<2x8xf32>
    %cst_11 = arith.constant dense<0xFF800000> : vector<2xf32>
    %29 = vector.multi_reduction <maximumf>, %28, %cst_11 [1] : vector<2x8xf32> to vector<2xf32>
    %30 = vector.shape_cast %29 : vector<2xf32> to vector<2x1xf32>
    %31 = vector.broadcast %30 : vector<2x1xf32> to vector<2x8xf32>
    %32 = arith.subf %28, %31 : vector<2x8xf32>
    %33 = math.exp %32 : vector<2x8xf32>
    %cst_12 = arith.constant dense<0.000000e+00> : vector<2xf32>
    %34 = vector.multi_reduction <add>, %33, %cst_12 [1] : vector<2x8xf32> to vector<2xf32>
    %35 = vector.shape_cast %34 : vector<2xf32> to vector<2x1xf32>
    %36 = tpu.reciprocal %35 {approx = true} : vector<2x1xf32> -> vector<2x1xf32>
    %37 = vector.broadcast %36 : vector<2x1xf32> to vector<2x8xf32>
    %38 = arith.mulf %33, %37 : vector<2x8xf32>
    %39 = vector.shape_cast %38 : vector<2x8xf32> to vector<2x8x1xf32>
    %40 = vector.broadcast %39 : vector<2x8x1xf32> to vector<2x8x64xf32>
    %41 = arith.mulf %40, %0 : vector<2x8x64xf32>
    %cst_13 = arith.constant dense<0.000000e+00> : vector<2x64xf32>
    %42 = vector.multi_reduction <add>, %41, %cst_13 [1] : vector<2x8x64xf32> to vector<2x64xf32>
    %c0_14 = arith.constant 0 : index
    %c0_15 = arith.constant 0 : index
    %43 = vector.load %arg7[%c0_14, %c0_15] : memref<32x96xf32, #tpu.memory_space<vmem>>, vector<32x96xf32>
    %c0_16 = arith.constant 0 : index
    %c0_17 = arith.constant 0 : index
    %44 = vector.load %arg8[%c0_16, %c0_17] : memref<2x96xf32, #tpu.memory_space<vmem>>, vector<2x96xf32>
    %45 = vector.extract_strided_slice %44 {offsets = [0, 0], sizes = [1, 96], strides = [1, 1]} : vector<2x96xf32> to vector<1x96xf32>
    %46 = vector.extract_strided_slice %44 {offsets = [1, 64], sizes = [1, 32], strides = [1, 1]} : vector<2x96xf32> to vector<1x32xf32>
    %c0_18 = arith.constant 0 : index
    %c0_19 = arith.constant 0 : index
    %47 = vector.load %arg9[%c0_18, %c0_19] : memref<32x96xf32, #tpu.memory_space<vmem>>, vector<32x96xf32>
    %c0_20 = arith.constant 0 : index
    %c0_21 = arith.constant 0 : index
    %48 = vector.load %arg10[%c0_20, %c0_21] : memref<32x96xf32, #tpu.memory_space<vmem>>, vector<32x96xf32>
    %c0_22 = arith.constant 0 : index
    %c0_23 = arith.constant 0 : index
    %49 = vector.load %arg11[%c0_22, %c0_23] : memref<2x96xf32, #tpu.memory_space<vmem>>, vector<2x96xf32>
    %50 = vector.extract_strided_slice %49 {offsets = [0, 0], sizes = [1, 96], strides = [1, 1]} : vector<2x96xf32> to vector<1x96xf32>
    %51 = vector.extract_strided_slice %49 {offsets = [1, 64], sizes = [1, 32], strides = [1, 1]} : vector<2x96xf32> to vector<1x32xf32>
    %c0_24 = arith.constant 0 : index
    %c0_25 = arith.constant 0 : index
    %52 = vector.load %arg2[%c0_24, %c0_25] : memref<16x32xf32, #tpu.memory_space<vmem>>, vector<16x32xf32>
    %c64 = arith.constant 64 : index
    %c0_26 = arith.constant 0 : index
    %53 = vector.load %arg6[%c64, %c0_26] : memref<96x96xf32, #tpu.memory_space<vmem>>, vector<32x96xf32>
    %cst_27 = arith.constant dense<0.000000e+00> : vector<16x96xf32>
    %54 = tpu.matmul %52, %53, %cst_27 {dimension_numbers = #tpu.dot_dimension_numbers<[1], [0], [0], [1], [0, 0, 1, 1], [], []>} : vector<16x32xf32>, vector<32x96xf32>, vector<16x96xf32> -> vector<16x96xf32>
    %c0_28 = arith.constant 0 : index
    %c0_29 = arith.constant 0 : index
    %55 = vector.load %arg6[%c0_28, %c0_29] : memref<96x96xf32, #tpu.memory_space<vmem>>, vector<64x96xf32>
    %cst_30 = arith.constant dense<0.000000e+00> : vector<2x96xf32>
    %56 = tpu.matmul %42, %55, %cst_30 {dimension_numbers = #tpu.dot_dimension_numbers<[1], [0], [0], [1], [0, 0, 1, 1], [], []>} : vector<2x64xf32>, vector<64x96xf32>, vector<2x96xf32> -> vector<2x96xf32>
    %57 = vector.broadcast %45 : vector<1x96xf32> to vector<2x96xf32>
    %58 = arith.addf %56, %57 : vector<2x96xf32>
    %59 = vector.extract_strided_slice %54 {offsets = [0, 0], sizes = [2, 96], strides = [1, 1]} : vector<16x96xf32> to vector<2x96xf32>
    %60 = arith.addf %59, %58 : vector<2x96xf32>
    %61 = vector.extract_strided_slice %54 {offsets = [2, 0], sizes = [2, 96], strides = [1, 1]} : vector<16x96xf32> to vector<2x96xf32>
    %62 = arith.addf %61, %58 : vector<2x96xf32>
    %63 = vector.extract_strided_slice %54 {offsets = [4, 0], sizes = [2, 96], strides = [1, 1]} : vector<16x96xf32> to vector<2x96xf32>
    %64 = arith.addf %63, %58 : vector<2x96xf32>
    %65 = vector.extract_strided_slice %54 {offsets = [6, 0], sizes = [2, 96], strides = [1, 1]} : vector<16x96xf32> to vector<2x96xf32>
    %66 = arith.addf %65, %58 : vector<2x96xf32>
    %67 = vector.extract_strided_slice %54 {offsets = [8, 0], sizes = [2, 96], strides = [1, 1]} : vector<16x96xf32> to vector<2x96xf32>
    %68 = arith.addf %67, %58 : vector<2x96xf32>
    %69 = vector.extract_strided_slice %54 {offsets = [10, 0], sizes = [2, 96], strides = [1, 1]} : vector<16x96xf32> to vector<2x96xf32>
    %70 = arith.addf %69, %58 : vector<2x96xf32>
    %71 = vector.extract_strided_slice %54 {offsets = [12, 0], sizes = [2, 96], strides = [1, 1]} : vector<16x96xf32> to vector<2x96xf32>
    %72 = arith.addf %71, %58 : vector<2x96xf32>
    %73 = vector.extract_strided_slice %54 {offsets = [14, 0], sizes = [2, 96], strides = [1, 1]} : vector<16x96xf32> to vector<2x96xf32>
    %74 = arith.addf %73, %58 : vector<2x96xf32>
    %75 = vector.extract_strided_slice %1 {offsets = [0, 0, 0], sizes = [1, 2, 32], strides = [1, 1, 1]} : vector<2x2x32xf32> to vector<1x2x32xf32>
    %76 = vector.shape_cast %75 : vector<1x2x32xf32> to vector<2x32xf32>
    %77 = vector.extract_strided_slice %1 {offsets = [1, 0, 0], sizes = [1, 2, 32], strides = [1, 1, 1]} : vector<2x2x32xf32> to vector<1x2x32xf32>
    %78 = vector.shape_cast %77 : vector<1x2x32xf32> to vector<2x32xf32>
    %cst_31 = arith.constant dense<0.000000e+00> : vector<2x96xf32>
    %79 = tpu.matmul %76, %43, %cst_31 {dimension_numbers = #tpu.dot_dimension_numbers<[1], [0], [0], [1], [0, 0, 1, 1], [], []>} : vector<2x32xf32>, vector<32x96xf32>, vector<2x96xf32> -> vector<2x96xf32>
    %80 = vector.extract_strided_slice %60 {offsets = [0, 0], sizes = [2, 64], strides = [1, 1]} : vector<2x96xf32> to vector<2x64xf32>
    %81 = vector.extract_strided_slice %79 {offsets = [0, 0], sizes = [2, 64], strides = [1, 1]} : vector<2x96xf32> to vector<2x64xf32>
    %82 = arith.addf %80, %81 : vector<2x64xf32>
    %83 = arith.negf %82 : vector<2x64xf32>
    %84 = math.exp %83 : vector<2x64xf32>
    %cst_32 = arith.constant 1.000000e+00 : f32
    %85 = vector.broadcast %cst_32 : f32 to vector<2x64xf32>
    %86 = arith.addf %85, %84 : vector<2x64xf32>
    %87 = arith.divf %85, %86 : vector<2x64xf32>
    %88 = vector.extract_strided_slice %87 {offsets = [0, 0], sizes = [2, 32], strides = [1, 1]} : vector<2x64xf32> to vector<2x32xf32>
    %89 = vector.extract_strided_slice %87 {offsets = [0, 32], sizes = [2, 32], strides = [1, 1]} : vector<2x64xf32> to vector<2x32xf32>
    %90 = vector.extract_strided_slice %60 {offsets = [0, 64], sizes = [2, 32], strides = [1, 1]} : vector<2x96xf32> to vector<2x32xf32>
    %91 = vector.extract_strided_slice %79 {offsets = [0, 64], sizes = [2, 32], strides = [1, 1]} : vector<2x96xf32> to vector<2x32xf32>
    %92 = vector.broadcast %46 : vector<1x32xf32> to vector<2x32xf32>
    %93 = arith.addf %91, %92 : vector<2x32xf32>
    %94 = arith.mulf %88, %93 : vector<2x32xf32>
    %95 = arith.addf %90, %94 : vector<2x32xf32>
    %96 = math.tanh %95 : vector<2x32xf32>
    %97 = arith.subf %76, %96 : vector<2x32xf32>
    %98 = arith.mulf %89, %97 : vector<2x32xf32>
    %99 = arith.addf %96, %98 : vector<2x32xf32>
    %cst_33 = arith.constant dense<0.000000e+00> : vector<2x96xf32>
    %100 = tpu.matmul %99, %43, %cst_33 {dimension_numbers = #tpu.dot_dimension_numbers<[1], [0], [0], [1], [0, 0, 1, 1], [], []>} : vector<2x32xf32>, vector<32x96xf32>, vector<2x96xf32> -> vector<2x96xf32>
    %101 = vector.extract_strided_slice %62 {offsets = [0, 0], sizes = [2, 64], strides = [1, 1]} : vector<2x96xf32> to vector<2x64xf32>
    %102 = vector.extract_strided_slice %100 {offsets = [0, 0], sizes = [2, 64], strides = [1, 1]} : vector<2x96xf32> to vector<2x64xf32>
    %103 = arith.addf %101, %102 : vector<2x64xf32>
    %104 = arith.negf %103 : vector<2x64xf32>
    %105 = math.exp %104 : vector<2x64xf32>
    %cst_34 = arith.constant 1.000000e+00 : f32
    %106 = vector.broadcast %cst_34 : f32 to vector<2x64xf32>
    %107 = arith.addf %106, %105 : vector<2x64xf32>
    %108 = arith.divf %106, %107 : vector<2x64xf32>
    %109 = vector.extract_strided_slice %108 {offsets = [0, 0], sizes = [2, 32], strides = [1, 1]} : vector<2x64xf32> to vector<2x32xf32>
    %110 = vector.extract_strided_slice %108 {offsets = [0, 32], sizes = [2, 32], strides = [1, 1]} : vector<2x64xf32> to vector<2x32xf32>
    %111 = vector.extract_strided_slice %62 {offsets = [0, 64], sizes = [2, 32], strides = [1, 1]} : vector<2x96xf32> to vector<2x32xf32>
    %112 = vector.extract_strided_slice %100 {offsets = [0, 64], sizes = [2, 32], strides = [1, 1]} : vector<2x96xf32> to vector<2x32xf32>
    %113 = vector.broadcast %46 : vector<1x32xf32> to vector<2x32xf32>
    %114 = arith.addf %112, %113 : vector<2x32xf32>
    %115 = arith.mulf %109, %114 : vector<2x32xf32>
    %116 = arith.addf %111, %115 : vector<2x32xf32>
    %117 = math.tanh %116 : vector<2x32xf32>
    %118 = arith.subf %99, %117 : vector<2x32xf32>
    %119 = arith.mulf %110, %118 : vector<2x32xf32>
    %120 = arith.addf %117, %119 : vector<2x32xf32>
    %cst_35 = arith.constant dense<0.000000e+00> : vector<2x96xf32>
    %121 = tpu.matmul %99, %47, %cst_35 {dimension_numbers = #tpu.dot_dimension_numbers<[1], [0], [0], [1], [0, 0, 1, 1], [], []>} : vector<2x32xf32>, vector<32x96xf32>, vector<2x96xf32> -> vector<2x96xf32>
    %122 = vector.broadcast %50 : vector<1x96xf32> to vector<2x96xf32>
    %123 = arith.addf %121, %122 : vector<2x96xf32>
    %cst_36 = arith.constant dense<0.000000e+00> : vector<2x96xf32>
    %124 = tpu.matmul %78, %48, %cst_36 {dimension_numbers = #tpu.dot_dimension_numbers<[1], [0], [0], [1], [0, 0, 1, 1], [], []>} : vector<2x32xf32>, vector<32x96xf32>, vector<2x96xf32> -> vector<2x96xf32>
    %125 = vector.extract_strided_slice %123 {offsets = [0, 0], sizes = [2, 64], strides = [1, 1]} : vector<2x96xf32> to vector<2x64xf32>
    %126 = vector.extract_strided_slice %124 {offsets = [0, 0], sizes = [2, 64], strides = [1, 1]} : vector<2x96xf32> to vector<2x64xf32>
    %127 = arith.addf %125, %126 : vector<2x64xf32>
    %128 = arith.negf %127 : vector<2x64xf32>
    %129 = math.exp %128 : vector<2x64xf32>
    %cst_37 = arith.constant 1.000000e+00 : f32
    %130 = vector.broadcast %cst_37 : f32 to vector<2x64xf32>
    %131 = arith.addf %130, %129 : vector<2x64xf32>
    %132 = arith.divf %130, %131 : vector<2x64xf32>
    %133 = vector.extract_strided_slice %132 {offsets = [0, 0], sizes = [2, 32], strides = [1, 1]} : vector<2x64xf32> to vector<2x32xf32>
    %134 = vector.extract_strided_slice %132 {offsets = [0, 32], sizes = [2, 32], strides = [1, 1]} : vector<2x64xf32> to vector<2x32xf32>
    %135 = vector.extract_strided_slice %123 {offsets = [0, 64], sizes = [2, 32], strides = [1, 1]} : vector<2x96xf32> to vector<2x32xf32>
    %136 = vector.extract_strided_slice %124 {offsets = [0, 64], sizes = [2, 32], strides = [1, 1]} : vector<2x96xf32> to vector<2x32xf32>
    %137 = vector.broadcast %51 : vector<1x32xf32> to vector<2x32xf32>
    %138 = arith.addf %136, %137 : vector<2x32xf32>
    %139 = arith.mulf %133, %138 : vector<2x32xf32>
    %140 = arith.addf %135, %139 : vector<2x32xf32>
    %141 = math.tanh %140 : vector<2x32xf32>
    %142 = arith.subf %78, %141 : vector<2x32xf32>
    %143 = arith.mulf %134, %142 : vector<2x32xf32>
    %144 = arith.addf %141, %143 : vector<2x32xf32>
    %cst_38 = arith.constant dense<0.000000e+00> : vector<2x96xf32>
    %145 = tpu.matmul %120, %43, %cst_38 {dimension_numbers = #tpu.dot_dimension_numbers<[1], [0], [0], [1], [0, 0, 1, 1], [], []>} : vector<2x32xf32>, vector<32x96xf32>, vector<2x96xf32> -> vector<2x96xf32>
    %146 = vector.extract_strided_slice %64 {offsets = [0, 0], sizes = [2, 64], strides = [1, 1]} : vector<2x96xf32> to vector<2x64xf32>
    %147 = vector.extract_strided_slice %145 {offsets = [0, 0], sizes = [2, 64], strides = [1, 1]} : vector<2x96xf32> to vector<2x64xf32>
    %148 = arith.addf %146, %147 : vector<2x64xf32>
    %149 = arith.negf %148 : vector<2x64xf32>
    %150 = math.exp %149 : vector<2x64xf32>
    %cst_39 = arith.constant 1.000000e+00 : f32
    %151 = vector.broadcast %cst_39 : f32 to vector<2x64xf32>
    %152 = arith.addf %151, %150 : vector<2x64xf32>
    %153 = arith.divf %151, %152 : vector<2x64xf32>
    %154 = vector.extract_strided_slice %153 {offsets = [0, 0], sizes = [2, 32], strides = [1, 1]} : vector<2x64xf32> to vector<2x32xf32>
    %155 = vector.extract_strided_slice %153 {offsets = [0, 32], sizes = [2, 32], strides = [1, 1]} : vector<2x64xf32> to vector<2x32xf32>
    %156 = vector.extract_strided_slice %64 {offsets = [0, 64], sizes = [2, 32], strides = [1, 1]} : vector<2x96xf32> to vector<2x32xf32>
    %157 = vector.extract_strided_slice %145 {offsets = [0, 64], sizes = [2, 32], strides = [1, 1]} : vector<2x96xf32> to vector<2x32xf32>
    %158 = vector.broadcast %46 : vector<1x32xf32> to vector<2x32xf32>
    %159 = arith.addf %157, %158 : vector<2x32xf32>
    %160 = arith.mulf %154, %159 : vector<2x32xf32>
    %161 = arith.addf %156, %160 : vector<2x32xf32>
    %162 = math.tanh %161 : vector<2x32xf32>
    %163 = arith.subf %120, %162 : vector<2x32xf32>
    %164 = arith.mulf %155, %163 : vector<2x32xf32>
    %165 = arith.addf %162, %164 : vector<2x32xf32>
    %cst_40 = arith.constant dense<0.000000e+00> : vector<2x96xf32>
    %166 = tpu.matmul %120, %47, %cst_40 {dimension_numbers = #tpu.dot_dimension_numbers<[1], [0], [0], [1], [0, 0, 1, 1], [], []>} : vector<2x32xf32>, vector<32x96xf32>, vector<2x96xf32> -> vector<2x96xf32>
    %167 = vector.broadcast %50 : vector<1x96xf32> to vector<2x96xf32>
    %168 = arith.addf %166, %167 : vector<2x96xf32>
    %cst_41 = arith.constant dense<0.000000e+00> : vector<2x96xf32>
    %169 = tpu.matmul %144, %48, %cst_41 {dimension_numbers = #tpu.dot_dimension_numbers<[1], [0], [0], [1], [0, 0, 1, 1], [], []>} : vector<2x32xf32>, vector<32x96xf32>, vector<2x96xf32> -> vector<2x96xf32>
    %170 = vector.extract_strided_slice %168 {offsets = [0, 0], sizes = [2, 64], strides = [1, 1]} : vector<2x96xf32> to vector<2x64xf32>
    %171 = vector.extract_strided_slice %169 {offsets = [0, 0], sizes = [2, 64], strides = [1, 1]} : vector<2x96xf32> to vector<2x64xf32>
    %172 = arith.addf %170, %171 : vector<2x64xf32>
    %173 = arith.negf %172 : vector<2x64xf32>
    %174 = math.exp %173 : vector<2x64xf32>
    %cst_42 = arith.constant 1.000000e+00 : f32
    %175 = vector.broadcast %cst_42 : f32 to vector<2x64xf32>
    %176 = arith.addf %175, %174 : vector<2x64xf32>
    %177 = arith.divf %175, %176 : vector<2x64xf32>
    %178 = vector.extract_strided_slice %177 {offsets = [0, 0], sizes = [2, 32], strides = [1, 1]} : vector<2x64xf32> to vector<2x32xf32>
    %179 = vector.extract_strided_slice %177 {offsets = [0, 32], sizes = [2, 32], strides = [1, 1]} : vector<2x64xf32> to vector<2x32xf32>
    %180 = vector.extract_strided_slice %168 {offsets = [0, 64], sizes = [2, 32], strides = [1, 1]} : vector<2x96xf32> to vector<2x32xf32>
    %181 = vector.extract_strided_slice %169 {offsets = [0, 64], sizes = [2, 32], strides = [1, 1]} : vector<2x96xf32> to vector<2x32xf32>
    %182 = vector.broadcast %51 : vector<1x32xf32> to vector<2x32xf32>
    %183 = arith.addf %181, %182 : vector<2x32xf32>
    %184 = arith.mulf %178, %183 : vector<2x32xf32>
    %185 = arith.addf %180, %184 : vector<2x32xf32>
    %186 = math.tanh %185 : vector<2x32xf32>
    %187 = arith.subf %144, %186 : vector<2x32xf32>
    %188 = arith.mulf %179, %187 : vector<2x32xf32>
    %189 = arith.addf %186, %188 : vector<2x32xf32>
    %cst_43 = arith.constant dense<0.000000e+00> : vector<2x96xf32>
    %190 = tpu.matmul %165, %43, %cst_43 {dimension_numbers = #tpu.dot_dimension_numbers<[1], [0], [0], [1], [0, 0, 1, 1], [], []>} : vector<2x32xf32>, vector<32x96xf32>, vector<2x96xf32> -> vector<2x96xf32>
    %191 = vector.extract_strided_slice %66 {offsets = [0, 0], sizes = [2, 64], strides = [1, 1]} : vector<2x96xf32> to vector<2x64xf32>
    %192 = vector.extract_strided_slice %190 {offsets = [0, 0], sizes = [2, 64], strides = [1, 1]} : vector<2x96xf32> to vector<2x64xf32>
    %193 = arith.addf %191, %192 : vector<2x64xf32>
    %194 = arith.negf %193 : vector<2x64xf32>
    %195 = math.exp %194 : vector<2x64xf32>
    %cst_44 = arith.constant 1.000000e+00 : f32
    %196 = vector.broadcast %cst_44 : f32 to vector<2x64xf32>
    %197 = arith.addf %196, %195 : vector<2x64xf32>
    %198 = arith.divf %196, %197 : vector<2x64xf32>
    %199 = vector.extract_strided_slice %198 {offsets = [0, 0], sizes = [2, 32], strides = [1, 1]} : vector<2x64xf32> to vector<2x32xf32>
    %200 = vector.extract_strided_slice %198 {offsets = [0, 32], sizes = [2, 32], strides = [1, 1]} : vector<2x64xf32> to vector<2x32xf32>
    %201 = vector.extract_strided_slice %66 {offsets = [0, 64], sizes = [2, 32], strides = [1, 1]} : vector<2x96xf32> to vector<2x32xf32>
    %202 = vector.extract_strided_slice %190 {offsets = [0, 64], sizes = [2, 32], strides = [1, 1]} : vector<2x96xf32> to vector<2x32xf32>
    %203 = vector.broadcast %46 : vector<1x32xf32> to vector<2x32xf32>
    %204 = arith.addf %202, %203 : vector<2x32xf32>
    %205 = arith.mulf %199, %204 : vector<2x32xf32>
    %206 = arith.addf %201, %205 : vector<2x32xf32>
    %207 = math.tanh %206 : vector<2x32xf32>
    %208 = arith.subf %165, %207 : vector<2x32xf32>
    %209 = arith.mulf %200, %208 : vector<2x32xf32>
    %210 = arith.addf %207, %209 : vector<2x32xf32>
    %cst_45 = arith.constant dense<0.000000e+00> : vector<2x96xf32>
    %211 = tpu.matmul %165, %47, %cst_45 {dimension_numbers = #tpu.dot_dimension_numbers<[1], [0], [0], [1], [0, 0, 1, 1], [], []>} : vector<2x32xf32>, vector<32x96xf32>, vector<2x96xf32> -> vector<2x96xf32>
    %212 = vector.broadcast %50 : vector<1x96xf32> to vector<2x96xf32>
    %213 = arith.addf %211, %212 : vector<2x96xf32>
    %cst_46 = arith.constant dense<0.000000e+00> : vector<2x96xf32>
    %214 = tpu.matmul %189, %48, %cst_46 {dimension_numbers = #tpu.dot_dimension_numbers<[1], [0], [0], [1], [0, 0, 1, 1], [], []>} : vector<2x32xf32>, vector<32x96xf32>, vector<2x96xf32> -> vector<2x96xf32>
    %215 = vector.extract_strided_slice %213 {offsets = [0, 0], sizes = [2, 64], strides = [1, 1]} : vector<2x96xf32> to vector<2x64xf32>
    %216 = vector.extract_strided_slice %214 {offsets = [0, 0], sizes = [2, 64], strides = [1, 1]} : vector<2x96xf32> to vector<2x64xf32>
    %217 = arith.addf %215, %216 : vector<2x64xf32>
    %218 = arith.negf %217 : vector<2x64xf32>
    %219 = math.exp %218 : vector<2x64xf32>
    %cst_47 = arith.constant 1.000000e+00 : f32
    %220 = vector.broadcast %cst_47 : f32 to vector<2x64xf32>
    %221 = arith.addf %220, %219 : vector<2x64xf32>
    %222 = arith.divf %220, %221 : vector<2x64xf32>
    %223 = vector.extract_strided_slice %222 {offsets = [0, 0], sizes = [2, 32], strides = [1, 1]} : vector<2x64xf32> to vector<2x32xf32>
    %224 = vector.extract_strided_slice %222 {offsets = [0, 32], sizes = [2, 32], strides = [1, 1]} : vector<2x64xf32> to vector<2x32xf32>
    %225 = vector.extract_strided_slice %213 {offsets = [0, 64], sizes = [2, 32], strides = [1, 1]} : vector<2x96xf32> to vector<2x32xf32>
    %226 = vector.extract_strided_slice %214 {offsets = [0, 64], sizes = [2, 32], strides = [1, 1]} : vector<2x96xf32> to vector<2x32xf32>
    %227 = vector.broadcast %51 : vector<1x32xf32> to vector<2x32xf32>
    %228 = arith.addf %226, %227 : vector<2x32xf32>
    %229 = arith.mulf %223, %228 : vector<2x32xf32>
    %230 = arith.addf %225, %229 : vector<2x32xf32>
    %231 = math.tanh %230 : vector<2x32xf32>
    %232 = arith.subf %189, %231 : vector<2x32xf32>
    %233 = arith.mulf %224, %232 : vector<2x32xf32>
    %234 = arith.addf %231, %233 : vector<2x32xf32>
    %cst_48 = arith.constant dense<0.000000e+00> : vector<2x96xf32>
    %235 = tpu.matmul %210, %43, %cst_48 {dimension_numbers = #tpu.dot_dimension_numbers<[1], [0], [0], [1], [0, 0, 1, 1], [], []>} : vector<2x32xf32>, vector<32x96xf32>, vector<2x96xf32> -> vector<2x96xf32>
    %236 = vector.extract_strided_slice %68 {offsets = [0, 0], sizes = [2, 64], strides = [1, 1]} : vector<2x96xf32> to vector<2x64xf32>
    %237 = vector.extract_strided_slice %235 {offsets = [0, 0], sizes = [2, 64], strides = [1, 1]} : vector<2x96xf32> to vector<2x64xf32>
    %238 = arith.addf %236, %237 : vector<2x64xf32>
    %239 = arith.negf %238 : vector<2x64xf32>
    %240 = math.exp %239 : vector<2x64xf32>
    %cst_49 = arith.constant 1.000000e+00 : f32
    %241 = vector.broadcast %cst_49 : f32 to vector<2x64xf32>
    %242 = arith.addf %241, %240 : vector<2x64xf32>
    %243 = arith.divf %241, %242 : vector<2x64xf32>
    %244 = vector.extract_strided_slice %243 {offsets = [0, 0], sizes = [2, 32], strides = [1, 1]} : vector<2x64xf32> to vector<2x32xf32>
    %245 = vector.extract_strided_slice %243 {offsets = [0, 32], sizes = [2, 32], strides = [1, 1]} : vector<2x64xf32> to vector<2x32xf32>
    %246 = vector.extract_strided_slice %68 {offsets = [0, 64], sizes = [2, 32], strides = [1, 1]} : vector<2x96xf32> to vector<2x32xf32>
    %247 = vector.extract_strided_slice %235 {offsets = [0, 64], sizes = [2, 32], strides = [1, 1]} : vector<2x96xf32> to vector<2x32xf32>
    %248 = vector.broadcast %46 : vector<1x32xf32> to vector<2x32xf32>
    %249 = arith.addf %247, %248 : vector<2x32xf32>
    %250 = arith.mulf %244, %249 : vector<2x32xf32>
    %251 = arith.addf %246, %250 : vector<2x32xf32>
    %252 = math.tanh %251 : vector<2x32xf32>
    %253 = arith.subf %210, %252 : vector<2x32xf32>
    %254 = arith.mulf %245, %253 : vector<2x32xf32>
    %255 = arith.addf %252, %254 : vector<2x32xf32>
    %cst_50 = arith.constant dense<0.000000e+00> : vector<2x96xf32>
    %256 = tpu.matmul %210, %47, %cst_50 {dimension_numbers = #tpu.dot_dimension_numbers<[1], [0], [0], [1], [0, 0, 1, 1], [], []>} : vector<2x32xf32>, vector<32x96xf32>, vector<2x96xf32> -> vector<2x96xf32>
    %257 = vector.broadcast %50 : vector<1x96xf32> to vector<2x96xf32>
    %258 = arith.addf %256, %257 : vector<2x96xf32>
    %cst_51 = arith.constant dense<0.000000e+00> : vector<2x96xf32>
    %259 = tpu.matmul %234, %48, %cst_51 {dimension_numbers = #tpu.dot_dimension_numbers<[1], [0], [0], [1], [0, 0, 1, 1], [], []>} : vector<2x32xf32>, vector<32x96xf32>, vector<2x96xf32> -> vector<2x96xf32>
    %260 = vector.extract_strided_slice %258 {offsets = [0, 0], sizes = [2, 64], strides = [1, 1]} : vector<2x96xf32> to vector<2x64xf32>
    %261 = vector.extract_strided_slice %259 {offsets = [0, 0], sizes = [2, 64], strides = [1, 1]} : vector<2x96xf32> to vector<2x64xf32>
    %262 = arith.addf %260, %261 : vector<2x64xf32>
    %263 = arith.negf %262 : vector<2x64xf32>
    %264 = math.exp %263 : vector<2x64xf32>
    %cst_52 = arith.constant 1.000000e+00 : f32
    %265 = vector.broadcast %cst_52 : f32 to vector<2x64xf32>
    %266 = arith.addf %265, %264 : vector<2x64xf32>
    %267 = arith.divf %265, %266 : vector<2x64xf32>
    %268 = vector.extract_strided_slice %267 {offsets = [0, 0], sizes = [2, 32], strides = [1, 1]} : vector<2x64xf32> to vector<2x32xf32>
    %269 = vector.extract_strided_slice %267 {offsets = [0, 32], sizes = [2, 32], strides = [1, 1]} : vector<2x64xf32> to vector<2x32xf32>
    %270 = vector.extract_strided_slice %258 {offsets = [0, 64], sizes = [2, 32], strides = [1, 1]} : vector<2x96xf32> to vector<2x32xf32>
    %271 = vector.extract_strided_slice %259 {offsets = [0, 64], sizes = [2, 32], strides = [1, 1]} : vector<2x96xf32> to vector<2x32xf32>
    %272 = vector.broadcast %51 : vector<1x32xf32> to vector<2x32xf32>
    %273 = arith.addf %271, %272 : vector<2x32xf32>
    %274 = arith.mulf %268, %273 : vector<2x32xf32>
    %275 = arith.addf %270, %274 : vector<2x32xf32>
    %276 = math.tanh %275 : vector<2x32xf32>
    %277 = arith.subf %234, %276 : vector<2x32xf32>
    %278 = arith.mulf %269, %277 : vector<2x32xf32>
    %279 = arith.addf %276, %278 : vector<2x32xf32>
    %cst_53 = arith.constant dense<0.000000e+00> : vector<2x96xf32>
    %280 = tpu.matmul %255, %43, %cst_53 {dimension_numbers = #tpu.dot_dimension_numbers<[1], [0], [0], [1], [0, 0, 1, 1], [], []>} : vector<2x32xf32>, vector<32x96xf32>, vector<2x96xf32> -> vector<2x96xf32>
    %281 = vector.extract_strided_slice %70 {offsets = [0, 0], sizes = [2, 64], strides = [1, 1]} : vector<2x96xf32> to vector<2x64xf32>
    %282 = vector.extract_strided_slice %280 {offsets = [0, 0], sizes = [2, 64], strides = [1, 1]} : vector<2x96xf32> to vector<2x64xf32>
    %283 = arith.addf %281, %282 : vector<2x64xf32>
    %284 = arith.negf %283 : vector<2x64xf32>
    %285 = math.exp %284 : vector<2x64xf32>
    %cst_54 = arith.constant 1.000000e+00 : f32
    %286 = vector.broadcast %cst_54 : f32 to vector<2x64xf32>
    %287 = arith.addf %286, %285 : vector<2x64xf32>
    %288 = arith.divf %286, %287 : vector<2x64xf32>
    %289 = vector.extract_strided_slice %288 {offsets = [0, 0], sizes = [2, 32], strides = [1, 1]} : vector<2x64xf32> to vector<2x32xf32>
    %290 = vector.extract_strided_slice %288 {offsets = [0, 32], sizes = [2, 32], strides = [1, 1]} : vector<2x64xf32> to vector<2x32xf32>
    %291 = vector.extract_strided_slice %70 {offsets = [0, 64], sizes = [2, 32], strides = [1, 1]} : vector<2x96xf32> to vector<2x32xf32>
    %292 = vector.extract_strided_slice %280 {offsets = [0, 64], sizes = [2, 32], strides = [1, 1]} : vector<2x96xf32> to vector<2x32xf32>
    %293 = vector.broadcast %46 : vector<1x32xf32> to vector<2x32xf32>
    %294 = arith.addf %292, %293 : vector<2x32xf32>
    %295 = arith.mulf %289, %294 : vector<2x32xf32>
    %296 = arith.addf %291, %295 : vector<2x32xf32>
    %297 = math.tanh %296 : vector<2x32xf32>
    %298 = arith.subf %255, %297 : vector<2x32xf32>
    %299 = arith.mulf %290, %298 : vector<2x32xf32>
    %300 = arith.addf %297, %299 : vector<2x32xf32>
    %cst_55 = arith.constant dense<0.000000e+00> : vector<2x96xf32>
    %301 = tpu.matmul %255, %47, %cst_55 {dimension_numbers = #tpu.dot_dimension_numbers<[1], [0], [0], [1], [0, 0, 1, 1], [], []>} : vector<2x32xf32>, vector<32x96xf32>, vector<2x96xf32> -> vector<2x96xf32>
    %302 = vector.broadcast %50 : vector<1x96xf32> to vector<2x96xf32>
    %303 = arith.addf %301, %302 : vector<2x96xf32>
    %cst_56 = arith.constant dense<0.000000e+00> : vector<2x96xf32>
    %304 = tpu.matmul %279, %48, %cst_56 {dimension_numbers = #tpu.dot_dimension_numbers<[1], [0], [0], [1], [0, 0, 1, 1], [], []>} : vector<2x32xf32>, vector<32x96xf32>, vector<2x96xf32> -> vector<2x96xf32>
    %305 = vector.extract_strided_slice %303 {offsets = [0, 0], sizes = [2, 64], strides = [1, 1]} : vector<2x96xf32> to vector<2x64xf32>
    %306 = vector.extract_strided_slice %304 {offsets = [0, 0], sizes = [2, 64], strides = [1, 1]} : vector<2x96xf32> to vector<2x64xf32>
    %307 = arith.addf %305, %306 : vector<2x64xf32>
    %308 = arith.negf %307 : vector<2x64xf32>
    %309 = math.exp %308 : vector<2x64xf32>
    %cst_57 = arith.constant 1.000000e+00 : f32
    %310 = vector.broadcast %cst_57 : f32 to vector<2x64xf32>
    %311 = arith.addf %310, %309 : vector<2x64xf32>
    %312 = arith.divf %310, %311 : vector<2x64xf32>
    %313 = vector.extract_strided_slice %312 {offsets = [0, 0], sizes = [2, 32], strides = [1, 1]} : vector<2x64xf32> to vector<2x32xf32>
    %314 = vector.extract_strided_slice %312 {offsets = [0, 32], sizes = [2, 32], strides = [1, 1]} : vector<2x64xf32> to vector<2x32xf32>
    %315 = vector.extract_strided_slice %303 {offsets = [0, 64], sizes = [2, 32], strides = [1, 1]} : vector<2x96xf32> to vector<2x32xf32>
    %316 = vector.extract_strided_slice %304 {offsets = [0, 64], sizes = [2, 32], strides = [1, 1]} : vector<2x96xf32> to vector<2x32xf32>
    %317 = vector.broadcast %51 : vector<1x32xf32> to vector<2x32xf32>
    %318 = arith.addf %316, %317 : vector<2x32xf32>
    %319 = arith.mulf %313, %318 : vector<2x32xf32>
    %320 = arith.addf %315, %319 : vector<2x32xf32>
    %321 = math.tanh %320 : vector<2x32xf32>
    %322 = arith.subf %279, %321 : vector<2x32xf32>
    %323 = arith.mulf %314, %322 : vector<2x32xf32>
    %324 = arith.addf %321, %323 : vector<2x32xf32>
    %cst_58 = arith.constant dense<0.000000e+00> : vector<2x96xf32>
    %325 = tpu.matmul %300, %43, %cst_58 {dimension_numbers = #tpu.dot_dimension_numbers<[1], [0], [0], [1], [0, 0, 1, 1], [], []>} : vector<2x32xf32>, vector<32x96xf32>, vector<2x96xf32> -> vector<2x96xf32>
    %326 = vector.extract_strided_slice %72 {offsets = [0, 0], sizes = [2, 64], strides = [1, 1]} : vector<2x96xf32> to vector<2x64xf32>
    %327 = vector.extract_strided_slice %325 {offsets = [0, 0], sizes = [2, 64], strides = [1, 1]} : vector<2x96xf32> to vector<2x64xf32>
    %328 = arith.addf %326, %327 : vector<2x64xf32>
    %329 = arith.negf %328 : vector<2x64xf32>
    %330 = math.exp %329 : vector<2x64xf32>
    %cst_59 = arith.constant 1.000000e+00 : f32
    %331 = vector.broadcast %cst_59 : f32 to vector<2x64xf32>
    %332 = arith.addf %331, %330 : vector<2x64xf32>
    %333 = arith.divf %331, %332 : vector<2x64xf32>
    %334 = vector.extract_strided_slice %333 {offsets = [0, 0], sizes = [2, 32], strides = [1, 1]} : vector<2x64xf32> to vector<2x32xf32>
    %335 = vector.extract_strided_slice %333 {offsets = [0, 32], sizes = [2, 32], strides = [1, 1]} : vector<2x64xf32> to vector<2x32xf32>
    %336 = vector.extract_strided_slice %72 {offsets = [0, 64], sizes = [2, 32], strides = [1, 1]} : vector<2x96xf32> to vector<2x32xf32>
    %337 = vector.extract_strided_slice %325 {offsets = [0, 64], sizes = [2, 32], strides = [1, 1]} : vector<2x96xf32> to vector<2x32xf32>
    %338 = vector.broadcast %46 : vector<1x32xf32> to vector<2x32xf32>
    %339 = arith.addf %337, %338 : vector<2x32xf32>
    %340 = arith.mulf %334, %339 : vector<2x32xf32>
    %341 = arith.addf %336, %340 : vector<2x32xf32>
    %342 = math.tanh %341 : vector<2x32xf32>
    %343 = arith.subf %300, %342 : vector<2x32xf32>
    %344 = arith.mulf %335, %343 : vector<2x32xf32>
    %345 = arith.addf %342, %344 : vector<2x32xf32>
    %cst_60 = arith.constant dense<0.000000e+00> : vector<2x96xf32>
    %346 = tpu.matmul %300, %47, %cst_60 {dimension_numbers = #tpu.dot_dimension_numbers<[1], [0], [0], [1], [0, 0, 1, 1], [], []>} : vector<2x32xf32>, vector<32x96xf32>, vector<2x96xf32> -> vector<2x96xf32>
    %347 = vector.broadcast %50 : vector<1x96xf32> to vector<2x96xf32>
    %348 = arith.addf %346, %347 : vector<2x96xf32>
    %cst_61 = arith.constant dense<0.000000e+00> : vector<2x96xf32>
    %349 = tpu.matmul %324, %48, %cst_61 {dimension_numbers = #tpu.dot_dimension_numbers<[1], [0], [0], [1], [0, 0, 1, 1], [], []>} : vector<2x32xf32>, vector<32x96xf32>, vector<2x96xf32> -> vector<2x96xf32>
    %350 = vector.extract_strided_slice %348 {offsets = [0, 0], sizes = [2, 64], strides = [1, 1]} : vector<2x96xf32> to vector<2x64xf32>
    %351 = vector.extract_strided_slice %349 {offsets = [0, 0], sizes = [2, 64], strides = [1, 1]} : vector<2x96xf32> to vector<2x64xf32>
    %352 = arith.addf %350, %351 : vector<2x64xf32>
    %353 = arith.negf %352 : vector<2x64xf32>
    %354 = math.exp %353 : vector<2x64xf32>
    %cst_62 = arith.constant 1.000000e+00 : f32
    %355 = vector.broadcast %cst_62 : f32 to vector<2x64xf32>
    %356 = arith.addf %355, %354 : vector<2x64xf32>
    %357 = arith.divf %355, %356 : vector<2x64xf32>
    %358 = vector.extract_strided_slice %357 {offsets = [0, 0], sizes = [2, 32], strides = [1, 1]} : vector<2x64xf32> to vector<2x32xf32>
    %359 = vector.extract_strided_slice %357 {offsets = [0, 32], sizes = [2, 32], strides = [1, 1]} : vector<2x64xf32> to vector<2x32xf32>
    %360 = vector.extract_strided_slice %348 {offsets = [0, 64], sizes = [2, 32], strides = [1, 1]} : vector<2x96xf32> to vector<2x32xf32>
    %361 = vector.extract_strided_slice %349 {offsets = [0, 64], sizes = [2, 32], strides = [1, 1]} : vector<2x96xf32> to vector<2x32xf32>
    %362 = vector.broadcast %51 : vector<1x32xf32> to vector<2x32xf32>
    %363 = arith.addf %361, %362 : vector<2x32xf32>
    %364 = arith.mulf %358, %363 : vector<2x32xf32>
    %365 = arith.addf %360, %364 : vector<2x32xf32>
    %366 = math.tanh %365 : vector<2x32xf32>
    %367 = arith.subf %324, %366 : vector<2x32xf32>
    %368 = arith.mulf %359, %367 : vector<2x32xf32>
    %369 = arith.addf %366, %368 : vector<2x32xf32>
    %cst_63 = arith.constant dense<0.000000e+00> : vector<2x96xf32>
    %370 = tpu.matmul %345, %43, %cst_63 {dimension_numbers = #tpu.dot_dimension_numbers<[1], [0], [0], [1], [0, 0, 1, 1], [], []>} : vector<2x32xf32>, vector<32x96xf32>, vector<2x96xf32> -> vector<2x96xf32>
    %371 = vector.extract_strided_slice %74 {offsets = [0, 0], sizes = [2, 64], strides = [1, 1]} : vector<2x96xf32> to vector<2x64xf32>
    %372 = vector.extract_strided_slice %370 {offsets = [0, 0], sizes = [2, 64], strides = [1, 1]} : vector<2x96xf32> to vector<2x64xf32>
    %373 = arith.addf %371, %372 : vector<2x64xf32>
    %374 = arith.negf %373 : vector<2x64xf32>
    %375 = math.exp %374 : vector<2x64xf32>
    %cst_64 = arith.constant 1.000000e+00 : f32
    %376 = vector.broadcast %cst_64 : f32 to vector<2x64xf32>
    %377 = arith.addf %376, %375 : vector<2x64xf32>
    %378 = arith.divf %376, %377 : vector<2x64xf32>
    %379 = vector.extract_strided_slice %378 {offsets = [0, 0], sizes = [2, 32], strides = [1, 1]} : vector<2x64xf32> to vector<2x32xf32>
    %380 = vector.extract_strided_slice %378 {offsets = [0, 32], sizes = [2, 32], strides = [1, 1]} : vector<2x64xf32> to vector<2x32xf32>
    %381 = vector.extract_strided_slice %74 {offsets = [0, 64], sizes = [2, 32], strides = [1, 1]} : vector<2x96xf32> to vector<2x32xf32>
    %382 = vector.extract_strided_slice %370 {offsets = [0, 64], sizes = [2, 32], strides = [1, 1]} : vector<2x96xf32> to vector<2x32xf32>
    %383 = vector.broadcast %46 : vector<1x32xf32> to vector<2x32xf32>
    %384 = arith.addf %382, %383 : vector<2x32xf32>
    %385 = arith.mulf %379, %384 : vector<2x32xf32>
    %386 = arith.addf %381, %385 : vector<2x32xf32>
    %387 = math.tanh %386 : vector<2x32xf32>
    %388 = arith.subf %345, %387 : vector<2x32xf32>
    %389 = arith.mulf %380, %388 : vector<2x32xf32>
    %390 = arith.addf %387, %389 : vector<2x32xf32>
    %cst_65 = arith.constant dense<0.000000e+00> : vector<2x96xf32>
    %391 = tpu.matmul %345, %47, %cst_65 {dimension_numbers = #tpu.dot_dimension_numbers<[1], [0], [0], [1], [0, 0, 1, 1], [], []>} : vector<2x32xf32>, vector<32x96xf32>, vector<2x96xf32> -> vector<2x96xf32>
    %392 = vector.broadcast %50 : vector<1x96xf32> to vector<2x96xf32>
    %393 = arith.addf %391, %392 : vector<2x96xf32>
    %cst_66 = arith.constant dense<0.000000e+00> : vector<2x96xf32>
    %394 = tpu.matmul %369, %48, %cst_66 {dimension_numbers = #tpu.dot_dimension_numbers<[1], [0], [0], [1], [0, 0, 1, 1], [], []>} : vector<2x32xf32>, vector<32x96xf32>, vector<2x96xf32> -> vector<2x96xf32>
    %395 = vector.extract_strided_slice %393 {offsets = [0, 0], sizes = [2, 64], strides = [1, 1]} : vector<2x96xf32> to vector<2x64xf32>
    %396 = vector.extract_strided_slice %394 {offsets = [0, 0], sizes = [2, 64], strides = [1, 1]} : vector<2x96xf32> to vector<2x64xf32>
    %397 = arith.addf %395, %396 : vector<2x64xf32>
    %398 = arith.negf %397 : vector<2x64xf32>
    %399 = math.exp %398 : vector<2x64xf32>
    %cst_67 = arith.constant 1.000000e+00 : f32
    %400 = vector.broadcast %cst_67 : f32 to vector<2x64xf32>
    %401 = arith.addf %400, %399 : vector<2x64xf32>
    %402 = arith.divf %400, %401 : vector<2x64xf32>
    %403 = vector.extract_strided_slice %402 {offsets = [0, 0], sizes = [2, 32], strides = [1, 1]} : vector<2x64xf32> to vector<2x32xf32>
    %404 = vector.extract_strided_slice %402 {offsets = [0, 32], sizes = [2, 32], strides = [1, 1]} : vector<2x64xf32> to vector<2x32xf32>
    %405 = vector.extract_strided_slice %393 {offsets = [0, 64], sizes = [2, 32], strides = [1, 1]} : vector<2x96xf32> to vector<2x32xf32>
    %406 = vector.extract_strided_slice %394 {offsets = [0, 64], sizes = [2, 32], strides = [1, 1]} : vector<2x96xf32> to vector<2x32xf32>
    %407 = vector.broadcast %51 : vector<1x32xf32> to vector<2x32xf32>
    %408 = arith.addf %406, %407 : vector<2x32xf32>
    %409 = arith.mulf %403, %408 : vector<2x32xf32>
    %410 = arith.addf %405, %409 : vector<2x32xf32>
    %411 = math.tanh %410 : vector<2x32xf32>
    %412 = arith.subf %369, %411 : vector<2x32xf32>
    %413 = arith.mulf %404, %412 : vector<2x32xf32>
    %414 = arith.addf %411, %413 : vector<2x32xf32>
    %cst_68 = arith.constant dense<0.000000e+00> : vector<2x96xf32>
    %415 = tpu.matmul %390, %47, %cst_68 {dimension_numbers = #tpu.dot_dimension_numbers<[1], [0], [0], [1], [0, 0, 1, 1], [], []>} : vector<2x32xf32>, vector<32x96xf32>, vector<2x96xf32> -> vector<2x96xf32>
    %416 = vector.broadcast %50 : vector<1x96xf32> to vector<2x96xf32>
    %417 = arith.addf %415, %416 : vector<2x96xf32>
    %cst_69 = arith.constant dense<0.000000e+00> : vector<2x96xf32>
    %418 = tpu.matmul %414, %48, %cst_69 {dimension_numbers = #tpu.dot_dimension_numbers<[1], [0], [0], [1], [0, 0, 1, 1], [], []>} : vector<2x32xf32>, vector<32x96xf32>, vector<2x96xf32> -> vector<2x96xf32>
    %419 = vector.extract_strided_slice %417 {offsets = [0, 0], sizes = [2, 64], strides = [1, 1]} : vector<2x96xf32> to vector<2x64xf32>
    %420 = vector.extract_strided_slice %418 {offsets = [0, 0], sizes = [2, 64], strides = [1, 1]} : vector<2x96xf32> to vector<2x64xf32>
    %421 = arith.addf %419, %420 : vector<2x64xf32>
    %422 = arith.negf %421 : vector<2x64xf32>
    %423 = math.exp %422 : vector<2x64xf32>
    %cst_70 = arith.constant 1.000000e+00 : f32
    %424 = vector.broadcast %cst_70 : f32 to vector<2x64xf32>
    %425 = arith.addf %424, %423 : vector<2x64xf32>
    %426 = arith.divf %424, %425 : vector<2x64xf32>
    %427 = vector.extract_strided_slice %426 {offsets = [0, 0], sizes = [2, 32], strides = [1, 1]} : vector<2x64xf32> to vector<2x32xf32>
    %428 = vector.extract_strided_slice %426 {offsets = [0, 32], sizes = [2, 32], strides = [1, 1]} : vector<2x64xf32> to vector<2x32xf32>
    %429 = vector.extract_strided_slice %417 {offsets = [0, 64], sizes = [2, 32], strides = [1, 1]} : vector<2x96xf32> to vector<2x32xf32>
    %430 = vector.extract_strided_slice %418 {offsets = [0, 64], sizes = [2, 32], strides = [1, 1]} : vector<2x96xf32> to vector<2x32xf32>
    %431 = vector.broadcast %51 : vector<1x32xf32> to vector<2x32xf32>
    %432 = arith.addf %430, %431 : vector<2x32xf32>
    %433 = arith.mulf %427, %432 : vector<2x32xf32>
    %434 = arith.addf %429, %433 : vector<2x32xf32>
    %435 = math.tanh %434 : vector<2x32xf32>
    %436 = arith.subf %414, %435 : vector<2x32xf32>
    %437 = arith.mulf %428, %436 : vector<2x32xf32>
    %438 = arith.addf %435, %437 : vector<2x32xf32>
    %439 = vector.shape_cast %144 : vector<2x32xf32> to vector<1x2x32xf32>
    %440 = vector.shape_cast %189 : vector<2x32xf32> to vector<1x2x32xf32>
    %441 = vector.shape_cast %234 : vector<2x32xf32> to vector<1x2x32xf32>
    %442 = vector.shape_cast %279 : vector<2x32xf32> to vector<1x2x32xf32>
    %443 = vector.shape_cast %324 : vector<2x32xf32> to vector<1x2x32xf32>
    %444 = vector.shape_cast %369 : vector<2x32xf32> to vector<1x2x32xf32>
    %445 = vector.shape_cast %414 : vector<2x32xf32> to vector<1x2x32xf32>
    %446 = vector.shape_cast %438 : vector<2x32xf32> to vector<1x2x32xf32>
    %447 = tpu.concatenate %439, %440, %441, %442, %443, %444, %445, %446 in 0 : vector<1x2x32xf32>, vector<1x2x32xf32>, vector<1x2x32xf32>, vector<1x2x32xf32>, vector<1x2x32xf32>, vector<1x2x32xf32>, vector<1x2x32xf32>, vector<1x2x32xf32> -> vector<8x2x32xf32>
    %c0_71 = arith.constant 0 : index
    %c0_72 = arith.constant 0 : index
    %c0_73 = arith.constant 0 : index
    %448 = vector.load %arg12[%c0_71, %c0_72, %c0_73] : memref<8x2x32xf32, #tpu.memory_space<vmem>>, vector<8x2x32xf32>
    tpu.vector_store %arg12[%c0_71, %c0_72, %c0_73], %447 {strides = array<i32>} : memref<8x2x32xf32, #tpu.memory_space<vmem>>, vector<8x2x32xf32>,
    %449 = vector.shape_cast %390 : vector<2x32xf32> to vector<1x2x32xf32>
    %450 = vector.shape_cast %438 : vector<2x32xf32> to vector<1x2x32xf32>
    %451 = tpu.concatenate %449, %450 in 0 : vector<1x2x32xf32>, vector<1x2x32xf32> -> vector<2x2x32xf32>
    %c0_74 = arith.constant 0 : index
    %c0_75 = arith.constant 0 : index
    %c0_76 = arith.constant 0 : index
    %452 = vector.load %arg13[%c0_74, %c0_75, %c0_76] : memref<2x2x32xf32, #tpu.memory_space<vmem>>, vector<2x2x32xf32>
    tpu.vector_store %arg13[%c0_74, %c0_75, %c0_76], %451 {strides = array<i32>} : memref<2x2x32xf32, #tpu.memory_space<vmem>>, vector<2x2x32xf32>,
    return
  }
  func.func @transform_0(%arg0: i32) -> (i32, i32, i32) {
    %c0_i32 = arith.constant 0 : i32
    %c0_i32_0 = arith.constant 0 : i32
    %c0_i32_1 = arith.constant 0 : i32
    %c0_i32_2 = arith.constant 0 : i32
    return %c0_i32, %c0_i32_0, %c0_i32_1 : i32, i32, i32
  }
  func.func @transform_1(%arg0: i32) -> (i32, i32) {
    %c0_i32 = arith.constant 0 : i32
    %c0_i32_0 = arith.constant 0 : i32
    %c0_i32_1 = arith.constant 0 : i32
    return %c0_i32, %c0_i32_0 : i32, i32
  }
  func.func @transform_2(%arg0: i32) -> (i32, i32, i32) {
    %c0_i32 = arith.constant 0 : i32
    %c0_i32_0 = arith.constant 0 : i32
    %c0_i32_1 = arith.constant 0 : i32
    %c0_i32_2 = arith.constant 0 : i32
    return %c0_i32, %c0_i32_0, %c0_i32_1 : i32, i32, i32
  }
  func.func @transform_3(%arg0: i32) -> (i32, i32) {
    %c0_i32 = arith.constant 0 : i32
    %c0_i32_0 = arith.constant 0 : i32
    %c0_i32_1 = arith.constant 0 : i32
    return %c0_i32, %c0_i32_0 : i32, i32
  }
  func.func @transform_4(%arg0: i32) -> i32 {
    %c0_i32 = arith.constant 0 : i32
    %c0_i32_0 = arith.constant 0 : i32
    return %c0_i32 : i32
  }
  func.func @transform_5(%arg0: i32) -> (i32, i32) {
    %c0_i32 = arith.constant 0 : i32
    %c0_i32_0 = arith.constant 0 : i32
    %c0_i32_1 = arith.constant 0 : i32
    return %c0_i32, %c0_i32_0 : i32, i32
  }
  func.func @transform_6(%arg0: i32) -> (i32, i32) {
    %c0_i32 = arith.constant 0 : i32
    %c0_i32_0 = arith.constant 0 : i32
    %c0_i32_1 = arith.constant 0 : i32
    return %c0_i32, %c0_i32_0 : i32, i32
  }
  func.func @transform_7(%arg0: i32) -> (i32, i32) {
    %c0_i32 = arith.constant 0 : i32
    %c0_i32_0 = arith.constant 0 : i32
    %c0_i32_1 = arith.constant 0 : i32
    return %c0_i32, %c0_i32_0 : i32, i32
  }
  func.func @transform_8(%arg0: i32) -> (i32, i32) {
    %c0_i32 = arith.constant 0 : i32
    %c0_i32_0 = arith.constant 0 : i32
    %c0_i32_1 = arith.constant 0 : i32
    return %c0_i32, %c0_i32_0 : i32, i32
  }
  func.func @transform_9(%arg0: i32) -> (i32, i32) {
    %c0_i32 = arith.constant 0 : i32
    %c0_i32_0 = arith.constant 0 : i32
    %c0_i32_1 = arith.constant 0 : i32
    return %c0_i32, %c0_i32_0 : i32, i32
  }
  func.func @transform_10(%arg0: i32) -> (i32, i32) {
    %c0_i32 = arith.constant 0 : i32
    %c0_i32_0 = arith.constant 0 : i32
    %c0_i32_1 = arith.constant 0 : i32
    return %c0_i32, %c0_i32_0 : i32, i32
  }
  func.func @transform_11(%arg0: i32) -> (i32, i32, i32) {
    %c0_i32 = arith.constant 0 : i32
    %c0_i32_0 = arith.constant 0 : i32
    %c0_i32_1 = arith.constant 0 : i32
    %c0_i32_2 = arith.constant 0 : i32
    return %c0_i32, %c0_i32_0, %c0_i32_1 : i32, i32, i32
  }
  func.func @transform_12(%arg0: i32) -> (i32, i32, i32) {
    %c0_i32 = arith.constant 0 : i32
    %c0_i32_0 = arith.constant 0 : i32
    %c0_i32_1 = arith.constant 0 : i32
    %c0_i32_2 = arith.constant 0 : i32
    return %c0_i32, %c0_i32_0, %c0_i32_1 : i32, i32, i32
  }
}

</mosaic_0001>

<bundles_post_ra>
// kernel: tpu_custom_call.1
= control target key start
LH: loop header
LB: loop body
LE: loop exit
PB: predicated region body
PF: predicated region fallthrough
CT: control target
= control target key end

     0   :  { %19 = vsyncpa [#allocation4], 0  ;;  %s4386_s0 = inlined_call_operand.hbm [shape: f32[2,8,64], index: 0, kind: input, shape index: {}]   ;;  %s4387_s1 = inlined_call_operand.hbm [shape: f32[16,32], index: 1, kind: input, shape index: {}]   ;;  %s4388_s2 = inlined_call_operand.vmem [shape: f32[2,2,32], index: 2, kind: input, shape index: {}]   ;;  %s4389_s3 = inlined_call_operand.vmem [shape: f32[1,96], index: 3, kind: input, shape index: {}]   ;;  %s4390_s4 = inlined_call_operand.<no memory space> [shape: f32[1], index: 4, kind: input, shape index: {}]   ;;  %s4391_s5 = inlined_call_operand.hbm [shape: f32[96,96], index: 5, kind: input, shape index: {}]   ;;  %s4392_s6 = inlined_call_operand.hbm [shape: f32[32,96], index: 6, kind: input, shape index: {}]   ;;  %s4393_s7 = inlined_call_operand.vmem [shape: f32[2,96], index: 7, kind: input, shape index: {}]   ;;  %s4394_s8 = inlined_call_operand.hbm [shape: f32[32,96], index: 8, kind: input, shape index: {}]   ;;  %s4395_s9 = inlined_call_operand.hbm [shape: f32[32,96], index: 9, kind: input, shape index: {}]   ;;  %s4396_s10 = inlined_call_operand.vmem [shape: f32[2,96], index: 10, kind: input, shape index: {}]   ;;  %s4397_s11 = inlined_call_operand.hbm [shape: f32[8,2,32], index: 11, kind: output, shape index: {0}]   ;;  %s4398_s12 = inlined_call_operand.hbm [shape: f32[2,2,32], index: 12, kind: output, shape index: {1}]  }
   0x1   :  { %20 = vsyncpa [#allocation7], 0 }
   0x2   :  { %21 = vsyncpa [#allocation10], 0 }
   0x3   :  { %22 = vsyncpa [#allocation13], 0 }
   0x4   :  { %23 = vsyncpa [#allocation5], 0 }
   0x5   :  { %24 = vsyncpa [#allocation16], 0  ;;  %s3671_s21 = smov [#allocation6]   ;;  %s3672_s23 = smov [#allocation9]  }
   0x6   :  { %s42_s22 = sshll.u32 %s3671_s21, 4  ;;  %s72_s24 = sshll.u32 %s3672_s23, 4  ;;  %s43_s22 = int_to_ptr.vmem [resolvable:$true] %s42_s22  ;;  %s73_s24 = int_to_ptr.vmem [resolvable:$true] %s72_s24 }
   0x7   :  { %s3507_s25 = scalar_lea.vmem %s43_s22, 256  ;;  %p3512_p1 = scmp.lt.s32.totalorder %s43_s22, %s43_s22 }
   0x8   :  { %p3508_p0 = scmp.ne.s32.totalorder %s43_s22, %s3507_s25  ;;  %p3513_p2 = scmp.lt.s32.totalorder %s3507_s25, %s3507_s25 }
   0xa   :  { %p3514_p3 = por %p3513_p2, %p3512_p1 }
   0xc   :  { %p3515_p4 = pnand %p3514_p3, %p3508_p0 }
   0xe   :  { %3518 = shalt.err (!%p3515_p4)
}
   0xf   :  { %s3673_s26 = smov 128   ;;  %s3674_s27 = smov 8  }
  0x10   :  { %48 = dma.hbm_to_vmem [thread:$0]  %s4387_s1, 256, %s43_s22, [#allocation7], %s3673_s26, %s3673_s26, %s3674_s27  }
  0x11   :  { %s3527_s30 = scalar_lea.vmem %s73_s24, 512  ;;  %p3532_p6 = scmp.lt.s32.totalorder %s73_s24, %s73_s24 }
  0x12   :  { %p3528_p5 = scmp.ne.s32.totalorder %s73_s24, %s3527_s30  ;;  %p3533_p7 = scmp.lt.s32.totalorder %s3527_s30, %s3527_s30 }
  0x14   :  { %p3534_p8 = por %p3533_p7, %p3532_p6 }
  0x16   :  { %p3535_p9 = pnand %p3534_p8, %p3528_p5 }
  0x18   :  { %3538 = shalt.err (!%p3535_p9)
}
  0x19   :  { %78 = dma.hbm_to_vmem [thread:$0]  %s4392_s6, 512, %s73_s24, [#allocation10], %s3673_s26, %s3673_s26, %s3674_s27  }
  0x1a   :  { %s3675_s15 = smov [#allocation3]   ;;  %s3676_s17 = smov [#allocation8]  }
  0x1b   :  { %s30_s16 = sshll.u32 %s3675_s15, 4  ;;  %s60_s18 = sshll.u32 %s3676_s17, 4  ;;  %s31_s16 = int_to_ptr.vmem [resolvable:$true] %s30_s16  ;;  %s61_s18 = int_to_ptr.vmem [resolvable:$true] %s60_s18 }
  0x1c   :  { %s3547_s1 = scalar_lea.vmem %s31_s16, 256  ;;  %p3552_p11 = scmp.lt.s32.totalorder %s31_s16, %s31_s16 }
  0x1d   :  { %p3548_p10 = scmp.ne.s32.totalorder %s31_s16, %s3547_s1  ;;  %p3553_p12 = scmp.lt.s32.totalorder %s3547_s1, %s3547_s1 }
  0x1f   :  { %p3554_p13 = por %p3553_p12, %p3552_p11 }
  0x21   :  { %p3555_p0 = pnand %p3554_p13, %p3548_p10 }
  0x23   :  { %3558 = shalt.err (!%p3555_p0)
}
  0x24   :  { %36 = dma.hbm_to_vmem [thread:$0]  %s4386_s0, 256, %s31_s16, [#allocation4], %s3673_s26, %s3673_s26, %s3674_s27  }
  0x25   :  { %s3567_s6 = scalar_lea.vmem %s61_s18, 1536  ;;  %p3572_p2 = scmp.lt.s32.totalorder %s61_s18, %s61_s18 }
  0x26   :  { %p3568_p1 = scmp.ne.s32.totalorder %s61_s18, %s3567_s6  ;;  %p3573_p3 = scmp.lt.s32.totalorder %s3567_s6, %s3567_s6 }
  0x28   :  { %p3574_p4 = por %p3573_p3, %p3572_p2 }
  0x2a   :  { %p3575_p5 = pnand %p3574_p4, %p3568_p1 }
  0x2c   :  { %3578 = shalt.err (!%p3575_p5)
}
  0x2d   :  { %66 = dma.hbm_to_vmem [thread:$0]  %s4391_s5, 1536, %s61_s18, [#allocation7], %s3673_s26, %s3673_s26, %s3674_s27  }
  0x2e   :  { %s3677_s23 = smov [#allocation11]   ;;  %s3678_s25 = smov [#allocation12]  }
  0x2f   :  { %s86_s24 = sshll.u32 %s3677_s23, 4  ;;  %s98_s28 = sshll.u32 %s3678_s25, 4  ;;  %s87_s24 = int_to_ptr.vmem [resolvable:$true] %s86_s24  ;;  %s99_s28 = int_to_ptr.vmem [resolvable:$true] %s98_s28 }
  0x30   :  { %s3587_s0 = scalar_lea.vmem %s87_s24, 512  ;;  %p3592_p7 = scmp.lt.s32.totalorder %s87_s24, %s87_s24 }
  0x31   :  { %p3588_p6 = scmp.ne.s32.totalorder %s87_s24, %s3587_s0  ;;  %p3593_p8 = scmp.lt.s32.totalorder %s3587_s0, %s3587_s0 }
  0x33   :  { %p3594_p9 = por %p3593_p8, %p3592_p7 }
  0x35   :  { %p3595_p10 = pnand %p3594_p9, %p3588_p6 }
  0x37   :  { %3598 = shalt.err (!%p3595_p10)
}
  0x38   :  { %92 = dma.hbm_to_vmem [thread:$0]  %s4394_s8, 512, %s87_s24, [#allocation10], %s3673_s26, %s3673_s26, %s3674_s27  }
  0x39   :  { %s3607_s5 = scalar_lea.vmem %s99_s28, 512  ;;  %p3612_p12 = scmp.lt.s32.totalorder %s99_s28, %s99_s28 }
  0x3a   :  { %p3608_p11 = scmp.ne.s32.totalorder %s99_s28, %s3607_s5  ;;  %p3613_p13 = scmp.lt.s32.totalorder %s3607_s5, %s3607_s5 }
  0x3c   :  { %p3614_p0 = por %p3613_p13, %p3612_p12 }
  0x3e   :  { %p3615_p1 = pnand %p3614_p0, %p3608_p11 }
  0x40   :  { %3618 = shalt.err (!%p3615_p1)
}
  0x41   :  { %104 = dma.hbm_to_vmem [thread:$0]  %s4395_s9, 512, %s99_s28, [#allocation13], %s3673_s26, %s3673_s26, %s3674_s27  }
  0x42   :  { %3659 = dma.done.wait [#allocation4], 256  }
  0x43   :  { %3660 = vsyncadd [#allocation4], 4294967040 }
  0x44   :  { %3661 = dma.done.wait [#allocation7], 1792  }
  0x45   :  { %3662 = vsyncadd [#allocation7], 4294965504 }
  0x46   :  { %3663 = dma.done.wait [#allocation10], 1024  }
  0x47   :  { %3664 = vsyncadd [#allocation10], 4294966272 }
  0x48   :  { %3665 = dma.done.wait [#allocation13], 512  }
  0x49   :  { %3666 = vsyncadd [#allocation13], 4294966784  ;;  %vm150_vm0 = vcmask 254976   ;;  %v3794_v0 = vld [vmem:[%s4388_s2] sm:$0x3]  ;;  %s3679_s26 = smov 96   ;;  %v177_v17 = vlaneseq  ;;  %v195_v32 = vstv %s4390_s4 }
  0x4a   :  { %v2891_v1 = vld [vmem:[%s4389_s3] ss:$0 sm:$0xff]  ;;  %v3802_v2 = vld [vmem:[%s4388_s2 + $0x2] sm:$0x3]  ;;  %vm158_vm1 = vcmask 7168   ;;  %s3680_s3 = smov 4  }
  0x4b   :  { %v149_v3 = vmul.f32 %v2891_v1, %v3794_v0  ;;  %v154_v4 = vmul.f32 %v2891_v1, %v3802_v2  ;;  %136 = vrot.lane.b32.xlu1 %v2891_v1, %s3679_s26  ;;  %s3681_s2 = smov 2   ;;  %s3682_s27 = smov 6   ;;  %v3810_v11 = vld [vmem:[#allocation3 + $0x8] sm:$0xff]  ;;  %vm141_vm2 = vcmask 523264   ;;  %v3814_v14 = vld [vmem:[#allocation3] sm:$0xff]  ;;  %vm170_vm3 = vcmask 15360  }
  0x4c   :  { %v178_v18 = vshrl.u32 %v177_v17, 7  ;;  %v3683_v20 = vmov 0   ;;  %vm172_vm4 = vcmask 31744   ;;  %vm174_vm5 = vcmask 48128   ;;  %v322_v1 = vld [vmem:[#allocation8 + $0x58] sm:$0xff]  ;;  %s3686_s6 = smov 64  }
  0x4d   :  { %v151_v5 = vsel %vm150_vm0, %v149_v3, 0.0  ;;  %v155_v6 = vsel %vm150_vm0, %v154_v4, 0.0  ;;  %3383 = vset.pattern.permute.xlu1 %v3683_v20  ;;  %3384 = vset.pattern.permute.xlu0 %v3683_v20  ;;  %v209_v41 = vand.u32 127, %v177_v17  ;;  %vm218_vm6 = vcmask 1041409   ;;  %v321_v3 = vld [vmem:[#allocation8 + $0x50] sm:$0xff]  ;;  %s3689_s24 = smov [#allocation15]  }
  0x4e   :  { %152 = vadd.xlane.f32.xlu0 %v151_v5  ;;  %v3818_v23 = vsub.s32 1, %v178_v18  ;;  %v3820_v24 = vsub.s32 0, %v178_v18  ;;  %vm221_vm7 = vcmask 58368   ;;  %vm323_vm8 = vcmask 261120   ;;  %3070 = vmatprep.subr.mxu0 %v322_v1  ;;  %v317_v4 = vld [vmem:[#allocation6] sm:$0xff]  ;;  %s2872_s25 = sshll.u32 %s3689_s24, 4  ;;  %s2873_s25 = int_to_ptr.vmem [resolvable:$true] %s2872_s25 }
  0x4f   :  { %v212_v43 = vsub.s32 %v209_v41, %v178_v18  ;;  %v3684_v5 = vmov 0.0   ;;  %3071 = vmatpush3.msra.mxu0 %v322_v1  ;;  %3078 = vmatprep.mubr.msk.f32.mxu0 %vm323_vm8, %v317_v4  ;;  %vm3685_vm9 = vmmov 0   ;;  %vm2852_vm10 = vcmask 261126  }
  0x50   :  { %3081 = vmatprep.subr.mxu1 %v3684_v5  ;;  %3072 = vmatprep.subr.mxu0 %v321_v3 }
  0x51   :  { %3097 = vmatprep.mubr.msk.f32.mxu1 %vm3685_vm9, %v3684_v5  ;;  %3073 = vmatpush3.msra.mxu0 %v321_v3 }
  0x52   :  { %156 = vadd.xlane.f32.xlu0 %v155_v6  ;;  %v320_v6 = vld [vmem:[#allocation8 + $0x48] sm:$0xff] }
  0x53   :  { %3074 = vmatprep.subr.mxu0 %v320_v6 }
  0x54   :  { %3075 = vmatpush3.msra.mxu0 %v320_v6 }
  0xbd   :  { %v137_v10 = vpop.permute.xlu1 %136 }
  0xbe   :  { %v140_v12 = vmul.f32 %v137_v10, %v3810_v11  ;;  %v139_v15 = vmul.f32 %v137_v10, %v3814_v14  ;;  %v3844_v10 = vld [vmem:[#allocation9 + $0x10] sm:$0xff] }
  0xc0   :  { %v145_v13 = vsel %vm141_vm2, %v140_v12, 0.0  ;;  %v142_v16 = vsel %vm141_vm2, %v139_v15, 0.0  ;;  %v3850_v12 = vld [vmem:[#allocation9 + $0x8] sm:$0xff] }
  0xd7   :  { %v153_v7 = vpop.xlane.xlu0 %152 }
  0xdb   :  { %v157_v8 = vpop.xlane.xlu0 %156 }
  0xdc   :  { %v159_v9 = vsel %vm158_vm1, %v153_v7, %v157_v8  ;;  %v319_v7 = vld [vmem:[#allocation8 + $0x40] sm:$0xff]  ;;  %v318_v8 = vld [vmem:[#allocation6 + $0x8] sm:$0xff] }
  0xdd   :  { %164 = vrot.lane.b32.xlu0 %v159_v9, %s3680_s3  ;;  %161 = vrot.lane.b32.xlu1 %v159_v9, %s3681_s2 }
  0xde   :  { %3076 = vmatprep.subr.mxu0 %v319_v7 }
  0xdf   :  { %3077 = vmatpush3.msra.mxu0 %v319_v7 }
  0xe0   :  { %3100 = vmatprep.subr.mxu0 %v3684_v5  ;;  %3079 = vmatmul.mubr.msk.f32.vlgmr.msra.gmra.mxu0 %vm323_vm8, %v318_v8 }
  0xe1   :  { %167 = vrot.lane.b32.xlu1 %v159_v9, %s3682_s27  ;;  %3108 = vmatprep.mubr.msk.f32.mxu0 %vm3685_vm9, %v3684_v5 }
  0xfc   :  { %146 = vadd.xlane.f32.xlu0 %v145_v13  ;;  %v3854_v13 = vld [vmem:[#allocation9] sm:$0xff] }
 0x105   :  { %143 = vadd.xlane.f32.xlu1 %v142_v16 }
 0x14f   :  { %v162_v19 = vpop.permute.xlu1 %161  ;;  %v165_v21 = vpop.permute.xlu0 %164 }
 0x150   :  { %v171_v22 = vsel %vm170_vm3, %v159_v9, %v162_v19  ;;  %v3840_v9 = vld [vmem:[#allocation9 + $0x18] sm:$0xff] }
 0x151   :  { %v173_v25 = vsel %vm172_vm4, %v171_v22, %v165_v21  ;;  %3101 = vmatpush3.msra.mxu0 %v3840_v9  ;;  %v412_v19 = vld [vmem:[#allocation8 + $0x38] sm:$0xff]  ;;  %v411_v22 = vld [vmem:[#allocation8 + $0x30] sm:$0xff] }
 0x152   :  { %3102 = vmatprep.subr.mxu0 %v3684_v5  ;;  %3082 = vmatpush3.msra.mxu1 %v412_v19  ;;  %v3918_v19 = vld [vmem:[#allocation11 + $0x8] sm:$0xff] }
 0x153   :  { %v168_v26 = vpop.permute.xlu1 %167  ;;  %3103 = vmatpush3.msra.mxu0 %v3844_v10  ;;  %3083 = vmatprep.subr.mxu1 %v3684_v5 }
 0x154   :  { %v175_v27 = vsel %vm174_vm5, %v173_v25, %v168_v26  ;;  %3104 = vmatprep.subr.mxu0 %v3684_v5  ;;  %3084 = vmatpush3.msra.mxu1 %v411_v22  ;;  %v410_v25 = vld [vmem:[#allocation8 + $0x28] sm:$0xff]  ;;  %v409_v26 = vld [vmem:[#allocation8 + $0x20] sm:$0xff] }
 0x155   :  { %v187_v28 = vrot.slane %v175_v27, %v3818_v23  ;;  %v180_v29 = vrot.slane %v175_v27, %v3820_v24  ;;  %3105 = vmatpush3.msra.mxu0 %v3850_v12  ;;  %3085 = vmatprep.subr.mxu1 %v3684_v5  ;;  %v408_v27 = vld [vmem:[#allocation8 + $0x18] sm:$0xff] }
 0x156   :  { %3106 = vmatprep.subr.mxu0 %v3684_v5  ;;  %3086 = vmatpush3.msra.mxu1 %v410_v25 }
 0x157   :  { %189 = vbcast.lane.b32.xlu0 %v187_v28, 256  ;;  %182 = vbcast.lane.b32.xlu1 %v180_v29, 256  ;;  %v407_v28 = vld [vmem:[#allocation8 + $0x10] sm:$0xff]  ;;  %v406_v29 = vld [vmem:[#allocation8 + $0x8] sm:$0xff] }
 0x158   :  { %3107 = vmatpush3.msra.mxu0 %v3854_v13  ;;  %3087 = vmatprep.subr.mxu1 %v3684_v5 }
 0x159   :  { %3109 = vmatmul.mubr.msk.f32.vlgmr.msra.gmra.mxu0 %vm323_vm8, %v3794_v0  ;;  %3111 = vmatprep.subr.mxu0 %v3684_v5 }
 0x15a   :  { %3112 = vmatpush3.msra.mxu0 %v3840_v9  ;;  %3119 = vmatprep.mubr.msk.f32.mxu0 %vm3685_vm9, %v3684_v5 }
 0x15b   :  { %3113 = vmatprep.subr.mxu0 %v3684_v5  ;;  %3088 = vmatpush3.msra.mxu1 %v409_v26  ;;  %v3933_v26 = vld [vmem:[#allocation12 + $0x18] sm:$0xff] }
 0x15c   :  { %3114 = vmatpush3.msra.mxu0 %v3844_v10  ;;  %3089 = vmatprep.subr.mxu1 %v3684_v5 }
 0x15d   :  { %3115 = vmatprep.subr.mxu0 %v3684_v5  ;;  %3090 = vmatpush3.msra.mxu1 %v408_v27 }
 0x15e   :  { %3116 = vmatpush3.msra.mxu0 %v3850_v12  ;;  %3091 = vmatprep.subr.mxu1 %v3684_v5 }
 0x15f   :  { %3117 = vmatprep.subr.mxu0 %v3684_v5  ;;  %3092 = vmatpush3.msra.mxu1 %v407_v28  ;;  %v3937_v28 = vld [vmem:[#allocation12 + $0x10] sm:$0xff] }
 0x160   :  { %3118 = vmatpush3.msra.mxu0 %v3854_v13  ;;  %3093 = vmatprep.subr.mxu1 %v3684_v5 }
 0x161   :  { %3133 = vmatprep.subr.mxu0 %v3684_v5  ;;  %3094 = vmatpush3.msra.mxu1 %v406_v29  ;;  %v3943_v29 = vld [vmem:[#allocation12 + $0x8] sm:$0xff] }
 0x162   :  { %3095 = vmatprep.subr.mxu1 %v3684_v5 }
 0x185   :  { %v147_v30 = vpop.xlane.xlu0 %146 }
 0x18e   :  { %v144_v31 = vpop.xlane.xlu1 %143 }
 0x1c9   :  { %v190_v33 = vpop.permute.xlu0 %189  ;;  %v183_v34 = vpop.permute.xlu1 %182 }
 0x1ca   :  { %v194_v35 = vadd.f32 %v190_v33, %v147_v30  ;;  %v193_v36 = vadd.f32 %v183_v34, %v144_v31  ;;  %v405_v30 = vld [vmem:[#allocation8] sm:$0xff] }
 0x1cb   :  { %3096 = vmatpush3.msra.mxu1 %v405_v30  ;;  %v307_v31 = vld [vmem:[%s4393_s7] sm:$0x3]  ;;  %s3687_s7 = smov 32  }
 0x1cc   :  { %v196_v37 = vadd.f32 %v195_v32, %v193_v36  ;;  %v197_v38 = vadd.f32 %v195_v32, %v194_v35  ;;  %3122 = vmatprep.subr.mxu1 %v3684_v5  ;;  %v3886_v32 = vpop.f32.mrf.mxu0  ;;  %v3889_v33 = vrot.slane %v307_v31, %v3818_v23  ;;  %v3949_v30 = vld [vmem:[#allocation12] sm:$0xff] }
 0x1ce   :  { %v198_v39 = vmax.f32 %v196_v37, 0.0  ;;  %v199_v40 = vmax.f32 %v197_v38, 0.0  ;;  %v3891_v34 = vpop.f32.mrf.mxu0 }
 0x1d0   :  { %203 = vperm.xlu1 %3383, %v198_v39  }
 0x1d4   :  { %206 = vperm.xlu1 %3383, %v199_v40  }
 0x219   :  { %v576_v35 = vpop.f32.mrf.mxu0 }
 0x21a   :  { %v591_v36 = vadd.f32 %v3889_v33, %v576_v35 }
 0x21b   :  { %v3110_v37 = vpop.f32.mrf.mxu0 }
 0x24b   :  { %v204_v42 = vpop.permute.xlu1 %203 }
 0x24c   :  { %v213_v45 = vrot.slane %v204_v42, %v212_v43 }
 0x24f   :  { %v207_v44 = vpop.permute.xlu1 %206 }
 0x250   :  { %v217_v46 = vrot.slane %v207_v44, %v212_v43 }
 0x252   :  { %v219_v47 = vsel %vm218_vm6, %v217_v46, %v213_v45 }
 0x253   :  { %v222_v48 = vsel %vm221_vm7, %v219_v47, -inf }
 0x254   :  { %223 = vmax.xlane.f32.xlu1 %v222_v48 }
 0x2dd   :  { %v224_v49 = vpop.xlane.xlu1 %223 }
 0x2de   :  { %v229_v50 = vrot.slane %v224_v49, %v3820_v24  ;;  %v233_v51 = vrot.slane %v224_v49, %v3818_v23 }
 0x2e0   :  { %v236_v52 = vsub.f32 %v198_v39, %v229_v50  ;;  %v237_v53 = vsub.f32 %v199_v40, %v233_v51 }
 0x2e2   :  { %v238_v54 = vmul.f32 1.442695, %v236_v52  ;;  %v240_v55 = vmul.f32 1.442695, %v237_v53 }
 0x2e4   :  { %3385 = vpow2.f32 %v238_v54 }
 0x2e5   :  { %3387 = vpow2.f32 %v240_v55 }
 0x2f1   :  { %v3831_v56 = vpop.eup %3385 }
 0x2f2   :  { %245 = vperm.xlu0 %3384, %v3831_v56   ;;  %v3388_v57 = vpop.eup %3387 }
 0x2f6   :  { %248 = vperm.xlu0 %3384, %v3388_v57  }
 0x36d   :  { %v246_v58 = vpop.permute.xlu0 %245 }
 0x36e   :  { %v253_v60 = vrot.slane %v246_v58, %v212_v43 }
 0x371   :  { %v249_v59 = vpop.permute.xlu0 %248 }
 0x372   :  { %v257_v61 = vrot.slane %v249_v59, %v212_v43 }
 0x374   :  { %v258_v62 = vsel %vm218_vm6, %v257_v61, %v253_v60 }
 0x375   :  { %v260_v63 = vsel %vm221_vm7, %v258_v62, 0.0 }
 0x376   :  { %261 = vadd.xlane.f32.xlu0 %v260_v63 }
 0x3ff   :  { %v262_v15 = vpop.xlane.xlu0 %261 }
 0x400   :  { %3389 = vrcp.f32 %v262_v15 }
 0x40d   :  { %v3390_v16 = vpop.eup %3389 }
 0x40e   :  { %v272_v17 = vrot.slane %v3390_v16, %v3818_v23  ;;  %v268_v18 = vrot.slane %v3390_v16, %v3820_v24 }
 0x410   :  { %v276_v20 = vmul.f32 %v3388_v57, %v272_v17  ;;  %v275_v21 = vmul.f32 %v3831_v56, %v268_v18  ;;  %v3912_v17 = vld [vmem:[#allocation11 + $0x18] sm:$0xff]  ;;  %v3914_v18 = vld [vmem:[#allocation11 + $0x10] sm:$0xff] }
 0x412   :  { %284 = vperm.xlu0 %3384, %v276_v20   ;;  %279 = vperm.xlu1 %3383, %v275_v21   ;;  %v3922_v20 = vld [vmem:[#allocation11] sm:$0xff] }
 0x416   :  { %593 = vrot.lane.b32.xlu1 %v591_v36, %s3686_s6 }
 0x48d   :  { %v285_v38 = vpop.permute.xlu0 %284  ;;  %v280_v39 = vpop.permute.xlu1 %279 }
 0x48e   :  { %v288_v40 = vmul.f32 %v285_v38, %v3810_v11  ;;  %v287_v41 = vmul.f32 %v280_v39, %v3814_v14  ;;  %v416_v14 = vrot.slane %v307_v31, %v3820_v24 }
 0x490   :  { %v296_v42 = vsel %vm141_vm2, %v288_v40, 0.0  ;;  %v289_v43 = vsel %vm141_vm2, %v287_v41, 0.0  ;;  %v316_v40 = vld [vmem:[%s4396_s10] sm:$0x3]  ;;  %s3688_s10 = smov [#allocation14]  }
 0x491   :  { %v297_v44 = vrot.slane %v296_v42, 4  ;;  %v290_v45 = vrot.slane %v289_v43, 4  ;;  %v594_v1 = vpop.permute.xlu1 %593  ;;  %v3980_v41 = vrot.slane %v316_v40, %v3818_v23  ;;  %s2860_s23 = sshll.u32 %s3688_s10, 4  ;;  %s2861_s23 = int_to_ptr.vmem [resolvable:$true] %s2860_s23 }
 0x492   :  { %s3619_s28 = scalar_lea.vmem %s2861_s23, 256  ;;  %p3624_p3 = scmp.lt.s32.totalorder %s2861_s23, %s2861_s23 }
 0x493   :  { %v298_v46 = vadd.f32 %v297_v44, %v296_v42  ;;  %v291_v47 = vadd.f32 %v290_v45, %v289_v43  ;;  %p3620_p2 = scmp.ne.s32.totalorder %s2861_s23, %s3619_s28  ;;  %p3625_p4 = scmp.lt.s32.totalorder %s3619_s28, %s3619_s28 }
 0x495   :  { %v299_v48 = vrot.slane %v298_v46, 2  ;;  %v292_v49 = vrot.slane %v291_v47, 2  ;;  %p3626_p5 = por %p3625_p4, %p3624_p3 }
 0x497   :  { %v300_v50 = vadd.f32 %v299_v48, %v298_v46  ;;  %v293_v51 = vadd.f32 %v292_v49, %v291_v47  ;;  %v3990_v48 = vrot.slane %v316_v40, %v3820_v24  ;;  %p3627_p6 = pnand %p3626_p5, %p3620_p2 }
 0x499   :  { %v301_v52 = vrot.slane %v300_v50, 1  ;;  %v294_v53 = vrot.slane %v293_v51, 1 }
 0x49b   :  { %v302_v54 = vadd.f32 %v301_v52, %v300_v50  ;;  %v295_v55 = vadd.f32 %v294_v53, %v293_v51 }
 0x49d   :  { %v419_v11 = vsel %vm218_vm6, %v302_v54, %v295_v55 }
 0x49e   :  { %3098 = vmatmul.mubr.msk.f32.vlgmr.msra.gmra.mxu1 %vm141_vm2, %v419_v11 }
 0x49f   :  { %3130 = vmatprep.mubr.msk.f32.mxu1 %vm3685_vm9, %v3684_v5  ;;  %3123 = vmatpush3.msra.mxu1 %v3912_v17 }
 0x4a0   :  { %3124 = vmatprep.subr.mxu1 %v3684_v5 }
 0x4a1   :  { %3125 = vmatpush3.msra.mxu1 %v3914_v18 }
 0x4a2   :  { %3126 = vmatprep.subr.mxu1 %v3684_v5 }
 0x4a3   :  { %3127 = vmatpush3.msra.mxu1 %v3918_v19 }
 0x4a4   :  { %3128 = vmatprep.subr.mxu1 %v3684_v5 }
 0x4a5   :  { %3129 = vmatpush3.msra.mxu1 %v3922_v20 }
 0x4a6   :  { %3144 = vmatprep.subr.mxu1 %v3684_v5 }
 0x55e   :  { %v488_v56 = vpop.f32.mrf.mxu1 }
 0x55f   :  { %v3904_v57 = vadd.f32 %v488_v56, %v416_v14 }
 0x560   :  { %v3099_v58 = vpop.f32.mrf.mxu1 }
 0x561   :  { %v492_v59 = vadd.f32 %v3904_v57, %v3891_v34  ;;  %v494_v45 = vrot.slane %v3904_v57, 6 }
 0x563   :  { %v580_v60 = vadd.f32 %v576_v35, %v492_v59  ;;  %v496_v47 = vadd.f32 %v494_v45, %v3891_v34 }
 0x565   :  { %v2896_v61 = vmul.f32 -1.442695, %v580_v60 }
 0x567   :  { %3391 = vpow2.f32 %v2896_v61 }
 0x574   :  { %v3392_v62 = vpop.eup %3391 }
 0x575   :  { %v584_v63 = vadd.f32 1.0, %v3392_v62 }
 0x577   :  { %3393 = vrcp.f32 %v584_v63 }
 0x584   :  { %v3394_v3 = vpop.eup %3393 }
 0x585   :  { %v596_v4 = vmul.f32 %v3394_v3, %v594_v1 }
 0x587   :  { %598 = vrot.lane.b32.xlu1 %v596_v4, %s3686_s6 }
 0x5f9   :  { %v599_v6 = vpop.permute.xlu1 %598 }
 0x5fa   :  { %v601_v7 = vadd.f32 %v599_v6, %v492_v59 }
 0x5fc   :  { %3395 = vtanh.f32 %v601_v7 }
 0x609   :  { %v3396_v8 = vpop.eup %3395 }
 0x60a   :  { %604 = vrot.lane.b32.xlu1 %v3396_v8, %s3686_s6 }
 0x67c   :  { %v605_v15 = vpop.permute.xlu1 %604 }
 0x67d   :  { %v607_v16 = vsub.f32 %v3794_v0, %v605_v15 }
 0x67f   :  { %609 = vrot.lane.b32.xlu1 %v607_v16, %s3687_s7 }
 0x6f1   :  { %v610_v0 = vpop.permute.xlu1 %609 }
 0x6f2   :  { %v612_v21 = vmul.f32 %v3394_v3, %v610_v0 }
 0x6f4   :  { %614 = vrot.lane.b32.xlu1 %v612_v21, %s3687_s7 }
 0x766   :  { %v615_v22 = vpop.permute.xlu1 %614 }
 0x767   :  { %v3929_v25 = vadd.f32 %v3396_v8, %v615_v22 }
 0x769   :  { %619 = vrot.lane.b32.xlu1 %v3929_v25, %s3686_s6 }
 0x7db   :  { %v620_v27 = vpop.permute.xlu1 %619 }
 0x7dc   :  { %3120 = vmatmul.mubr.msk.f32.vlgmr.msra.gmra.mxu0 %vm323_vm8, %v620_v27  ;;  %3131 = vmatmul.mubr.msk.f32.vlgmr.msra.gmra.mxu1 %vm323_vm8, %v620_v27 }
 0x7dd   :  { %3134 = vmatpush3.msra.mxu0 %v3933_v26  ;;  %3141 = vmatprep.mubr.msk.f32.mxu0 %vm3685_vm9, %v3684_v5 }
 0x7de   :  { %3135 = vmatprep.subr.mxu0 %v3684_v5  ;;  %3145 = vmatpush3.msra.mxu1 %v3840_v9 }
 0x7df   :  { %3136 = vmatpush3.msra.mxu0 %v3937_v28  ;;  %3146 = vmatprep.subr.mxu1 %v3684_v5 }
 0x7e0   :  { %3137 = vmatprep.subr.mxu0 %v3684_v5  ;;  %3147 = vmatpush3.msra.mxu1 %v3844_v10 }
 0x7e1   :  { %3138 = vmatpush3.msra.mxu0 %v3943_v29  ;;  %3148 = vmatprep.subr.mxu1 %v3684_v5 }
 0x7e2   :  { %3139 = vmatprep.subr.mxu0 %v3684_v5  ;;  %3149 = vmatpush3.msra.mxu1 %v3850_v12 }
 0x7e3   :  { %3140 = vmatpush3.msra.mxu0 %v3949_v30  ;;  %3150 = vmatprep.subr.mxu1 %v3684_v5 }
 0x7e4   :  { %3142 = vmatmul.mubr.msk.f32.vlgmr.msra.gmra.mxu0 %vm323_vm8, %v3802_v2  ;;  %3155 = vmatprep.subr.mxu0 %v3684_v5 }
 0x7e5   :  { %3156 = vmatpush3.msra.mxu0 %v3912_v17  ;;  %3151 = vmatpush3.msra.mxu1 %v3854_v13 }
 0x7e6   :  { %3157 = vmatprep.subr.mxu0 %v3684_v5  ;;  %3152 = vmatprep.mubr.msk.f32.mxu1 %vm3685_vm9, %v3684_v5 }
 0x7e7   :  { %3158 = vmatpush3.msra.mxu0 %v3914_v18  ;;  %3163 = vmatprep.mubr.msk.f32.mxu0 %vm3685_vm9, %v3684_v5 }
 0x7e8   :  { %3159 = vmatprep.subr.mxu0 %v3684_v5  ;;  %3166 = vmatprep.subr.mxu1 %v3684_v5 }
 0x7e9   :  { %3160 = vmatpush3.msra.mxu0 %v3918_v19 }
 0x7ea   :  { %3161 = vmatprep.subr.mxu0 %v3684_v5 }
 0x7eb   :  { %3162 = vmatpush3.msra.mxu0 %v3922_v20 }
 0x7ec   :  { %3177 = vmatprep.subr.mxu0 %v3684_v5 }
 0x89c   :  { %v689_v31 = vpop.f32.mrf.mxu0  ;;  %v801_v35 = vpop.f32.mrf.mxu1 }
 0x89d   :  { %v703_v36 = vadd.f32 %v689_v31, %v3889_v33  ;;  %v694_v46 = vrot.slane %v689_v31, 6  ;;  %v802_v50 = vadd.f32 %v801_v35, %v3990_v48 }
 0x89e   :  { %v3121_v37 = vpop.f32.mrf.mxu0  ;;  %v3132_v38 = vpop.f32.mrf.mxu1 }
 0x89f   :  { %v705_v39 = vrot.slane %v703_v36, 6  ;;  %v696_v23 = vadd.f32 %v694_v46, %v496_v47 }
 0x8a1   :  { %706 = vrot.lane.b32.xlu1 %v705_v39, %s3686_s6  ;;  %v2898_v49 = vmul.f32 -1.442695, %v696_v23 }
 0x8a3   :  { %3397 = vpow2.f32 %v2898_v49 }
 0x8a4   :  { %v874_v42 = vpop.f32.mrf.mxu0 }
 0x8a5   :  { %v889_v43 = vadd.f32 %v3980_v41, %v874_v42  ;;  %v878_v51 = vadd.f32 %v874_v42, %v802_v50 }
 0x8a6   :  { %v3143_v44 = vpop.f32.mrf.mxu0 }
 0x8a7   :  { %891 = vrot.lane.b32.xlu0 %v889_v43, %s3686_s6  ;;  %v2901_v52 = vmul.f32 -1.442695, %v878_v51 }
 0x8a9   :  { %3399 = vpow2.f32 %v2901_v52 }
 0x8b0   :  { %v3398_v53 = vpop.eup %3397 }
 0x8b1   :  { %v700_v54 = vadd.f32 1.0, %v3398_v53 }
 0x8b3   :  { %3401 = vrcp.f32 %v700_v54 }
 0x8b6   :  { %v3400_v55 = vpop.eup %3399 }
 0x8b7   :  { %v882_v11 = vadd.f32 1.0, %v3400_v55 }
 0x8b9   :  { %3403 = vrcp.f32 %v882_v11 }
 0x8c0   :  { %v3402_v14 = vpop.eup %3401 }
 0x8c6   :  { %v3404_v24 = vpop.eup %3403 }
 0x913   :  { %v707_v56 = vpop.permute.xlu1 %706 }
 0x914   :  { %v709_v58 = vmul.f32 %v3402_v14, %v707_v56 }
 0x916   :  { %711 = vrot.lane.b32.xlu1 %v709_v58, %s3686_s6 }
 0x919   :  { %v892_v59 = vpop.permute.xlu0 %891 }
 0x91a   :  { %v894_v60 = vmul.f32 %v3404_v24, %v892_v59 }
 0x91c   :  { %896 = vrot.lane.b32.xlu0 %v894_v60, %s3686_s6 }
 0x988   :  { %v712_v61 = vpop.permute.xlu1 %711 }
 0x989   :  { %v714_v62 = vadd.f32 %v712_v61, %v496_v47  ;;  %v497_v47 = vrot.slane %v3904_v57, 4 }
 0x98b   :  { %3405 = vtanh.f32 %v714_v62  ;;  %v499_v49 = vadd.f32 %v497_v47, %v3891_v34 }
 0x98e   :  { %v897_v63 = vpop.permute.xlu0 %896 }
 0x98f   :  { %v899_v1 = vadd.f32 %v897_v63, %v802_v50 }
 0x991   :  { %3407 = vtanh.f32 %v899_v1 }
 0x998   :  { %v3406_v3 = vpop.eup %3405 }
 0x999   :  { %v717_v4 = vrot.slane %v3406_v3, 2 }
 0x99b   :  { %v719_v6 = vsub.f32 %v3929_v25, %v717_v4 }
 0x99d   :  { %v721_v7 = vrot.slane %v719_v6, 6 }
 0x99e   :  { %v3408_v8 = vpop.eup %3407 }
 0x99f   :  { %902 = vrot.lane.b32.xlu0 %v3408_v8, %s3686_s6  ;;  %722 = vrot.lane.b32.xlu1 %v721_v7, %s3679_s26 }
 0xa11   :  { %v903_v15 = vpop.permute.xlu0 %902  ;;  %v723_v16 = vpop.permute.xlu1 %722 }
 0xa12   :  { %v905_v0 = vsub.f32 %v3802_v2, %v903_v15  ;;  %v725_v21 = vmul.f32 %v3402_v14, %v723_v16 }
 0xa14   :  { %907 = vrot.lane.b32.xlu0 %v905_v0, %s3687_s7  ;;  %727 = vrot.lane.b32.xlu1 %v725_v21, %s3687_s7 }
 0xa86   :  { %v908_v22 = vpop.permute.xlu0 %907  ;;  %v728_v27 = vpop.permute.xlu1 %727 }
 0xa87   :  { %v910_v31 = vmul.f32 %v3404_v24, %v908_v22  ;;  %v4001_v35 = vadd.f32 %v3406_v3, %v728_v27 }
 0xa89   :  { %v917_v25 = vrot.slane %v4001_v35, 2  ;;  %912 = vrot.lane.b32.xlu0 %v910_v31, %s3687_s7 }
 0xa8b   :  { %918 = vrot.lane.b32.xlu1 %v917_v25, %s3686_s6 }
 0xafb   :  { %v913_v36 = vpop.permute.xlu0 %912 }
 0xafc   :  { %v4006_v37 = vadd.f32 %v3408_v8, %v913_v36 }
 0xafd   :  { %v919_v2 = vpop.permute.xlu1 %918 }
 0xafe   :  { %1101 = vrot.lane.b32.xlu0 %v4006_v37, %s3686_s6  ;;  %3153 = vmatmul.mubr.msk.f32.vlgmr.msra.gmra.mxu1 %vm323_vm8, %v919_v2 }
 0xaff   :  { %3164 = vmatmul.mubr.msk.f32.vlgmr.msra.gmra.mxu0 %vm323_vm8, %v919_v2  ;;  %3167 = vmatpush3.msra.mxu1 %v3933_v26 }
 0xb00   :  { %3168 = vmatprep.subr.mxu1 %v3684_v5  ;;  %3174 = vmatprep.mubr.msk.f32.mxu1 %vm3685_vm9, %v3684_v5 }
 0xb01   :  { %3169 = vmatpush3.msra.mxu1 %v3937_v28  ;;  %3178 = vmatpush3.msra.mxu0 %v3840_v9 }
 0xb02   :  { %3170 = vmatprep.subr.mxu1 %v3684_v5  ;;  %3179 = vmatprep.subr.mxu0 %v3684_v5 }
 0xb03   :  { %3171 = vmatpush3.msra.mxu1 %v3943_v29  ;;  %3180 = vmatpush3.msra.mxu0 %v3844_v10 }
 0xb04   :  { %3172 = vmatprep.subr.mxu1 %v3684_v5  ;;  %3181 = vmatprep.subr.mxu0 %v3684_v5 }
 0xb05   :  { %3173 = vmatpush3.msra.mxu1 %v3949_v30  ;;  %3182 = vmatpush3.msra.mxu0 %v3850_v12 }
 0xb06   :  { %3188 = vmatprep.subr.mxu1 %v3684_v5  ;;  %3183 = vmatprep.subr.mxu0 %v3684_v5 }
 0xb07   :  { %3184 = vmatpush3.msra.mxu0 %v3854_v13  ;;  %3185 = vmatprep.mubr.msk.f32.mxu0 %vm3685_vm9, %v3684_v5 }
 0xb08   :  { %3199 = vmatprep.subr.mxu0 %v3684_v5 }
 0xb70   :  { %v1102_v38 = vpop.permute.xlu0 %1101 }
 0xb71   :  { %2837 = vst.msk [vmem:[#allocation14] sm:$0x3] %vm150_vm0, %v1102_v38  ;;  %3175 = vmatmul.mubr.msk.f32.vlgmr.msra.gmra.mxu1 %vm323_vm8, %v1102_v38 }
 0xb72   :  { %3189 = vmatpush3.msra.mxu1 %v3912_v17  ;;  %3196 = vmatprep.mubr.msk.f32.mxu1 %vm3685_vm9, %v3684_v5 }
 0xb73   :  { %3190 = vmatprep.subr.mxu1 %v3684_v5 }
 0xb74   :  { %3191 = vmatpush3.msra.mxu1 %v3914_v18 }
 0xb75   :  { %3192 = vmatprep.subr.mxu1 %v3684_v5 }
 0xb76   :  { %3193 = vmatpush3.msra.mxu1 %v3918_v19 }
 0xb77   :  { %3194 = vmatprep.subr.mxu1 %v3684_v5 }
 0xb78   :  { %3195 = vmatpush3.msra.mxu1 %v3922_v20 }
 0xb79   :  { %3210 = vmatprep.subr.mxu1 %v3684_v5 }
 0xbbe   :  { %v988_v39 = vpop.f32.mrf.mxu1 }
 0xbbf   :  { %v1002_v40 = vadd.f32 %v988_v39, %v3889_v33  ;;  %v1096_v42 = vpop.f32.mrf.mxu0  ;;  %v993_v23 = vrot.slane %v988_v39, 4 }
 0xbc0   :  { %v3154_v43 = vpop.f32.mrf.mxu1  ;;  %v1097_v24 = vadd.f32 %v1096_v42, %v3990_v48 }
 0xbc1   :  { %v1004_v44 = vrot.slane %v1002_v40, 4  ;;  %v3165_v46 = vpop.f32.mrf.mxu0  ;;  %v995_v50 = vadd.f32 %v993_v23, %v499_v49 }
 0xbc3   :  { %1005 = vrot.lane.b32.xlu1 %v1004_v44, %s3686_s6  ;;  %v2903_v51 = vmul.f32 -1.442695, %v995_v50 }
 0xbc5   :  { %3409 = vpow2.f32 %v2903_v51 }
 0xbd2   :  { %v3410_v52 = vpop.eup %3409 }
 0xbd3   :  { %v999_v53 = vadd.f32 1.0, %v3410_v52  ;;  %v500_v52 = vrot.slane %v3904_v57, 2 }
 0xbd5   :  { %3411 = vrcp.f32 %v999_v53 }
 0xbe2   :  { %v3412_v14 = vpop.eup %3411 }
 0xc31   :  { %v1171_v54 = vpop.f32.mrf.mxu1 }
 0xc32   :  { %v1182_v55 = vadd.f32 %v1171_v54, %v3980_v41  ;;  %v1175_v59 = vadd.f32 %v1171_v54, %v1097_v24  ;;  %v502_v54 = vadd.f32 %v500_v52, %v3891_v34 }
 0xc33   :  { %v3176_v11 = vpop.f32.mrf.mxu1 }
 0xc34   :  { %1184 = vrot.lane.b32.xlu0 %v1182_v55, %s3686_s6  ;;  %v2906_v60 = vmul.f32 -1.442695, %v1175_v59 }
 0xc35   :  { %v1006_v56 = vpop.permute.xlu1 %1005 }
 0xc36   :  { %v1008_v58 = vmul.f32 %v3412_v14, %v1006_v56  ;;  %3413 = vpow2.f32 %v2906_v60 }
 0xc38   :  { %1010 = vrot.lane.b32.xlu1 %v1008_v58, %s3686_s6 }
 0xc43   :  { %v3414_v61 = vpop.eup %3413 }
 0xc44   :  { %v1179_v62 = vadd.f32 1.0, %v3414_v61 }
 0xc46   :  { %3415 = vrcp.f32 %v1179_v62 }
 0xc53   :  { %v3416_v63 = vpop.eup %3415 }
 0xca6   :  { %v1185_v1 = vpop.permute.xlu0 %1184 }
 0xca7   :  { %v1187_v3 = vmul.f32 %v3416_v63, %v1185_v1 }
 0xca9   :  { %1189 = vrot.lane.b32.xlu0 %v1187_v3, %s3686_s6 }
 0xcaa   :  { %v1011_v4 = vpop.permute.xlu1 %1010 }
 0xcab   :  { %v1013_v6 = vadd.f32 %v1011_v4, %v499_v49 }
 0xcad   :  { %3417 = vtanh.f32 %v1013_v6 }
 0xcba   :  { %v3418_v7 = vpop.eup %3417 }
 0xcbb   :  { %v1016_v8 = vrot.slane %v3418_v7, 2 }
 0xcbd   :  { %v1018_v15 = vsub.f32 %v4001_v35, %v1016_v8 }
 0xcbf   :  { %v1020_v16 = vrot.slane %v1018_v15, 6 }
 0xcc1   :  { %1021 = vrot.lane.b32.xlu1 %v1020_v16, %s3679_s26 }
 0xd1b   :  { %v1190_v0 = vpop.permute.xlu0 %1189 }
 0xd1c   :  { %v1192_v21 = vadd.f32 %v1190_v0, %v1097_v24 }
 0xd1e   :  { %3419 = vtanh.f32 %v1192_v21 }
 0xd2b   :  { %v3420_v22 = vpop.eup %3419 }
 0xd2c   :  { %v1194_v27 = vsub.f32 %v4006_v37, %v3420_v22 }
 0xd2e   :  { %1196 = vrot.lane.b32.xlu0 %v1194_v27, %s3679_s26 }
 0xd33   :  { %v1022_v31 = vpop.permute.xlu1 %1021 }
 0xd34   :  { %v1024_v25 = vmul.f32 %v3412_v14, %v1022_v31 }
 0xd36   :  { %1026 = vrot.lane.b32.xlu1 %v1024_v25, %s3687_s7 }
 0xda0   :  { %v1197_v36 = vpop.permute.xlu0 %1196 }
 0xda1   :  { %v1199_v2 = vmul.f32 %v3416_v63, %v1197_v36 }
 0xda3   :  { %1201 = vrot.lane.b32.xlu0 %v1199_v2, %s3687_s7 }
 0xda8   :  { %v1027_v35 = vpop.permute.xlu1 %1026 }
 0xda9   :  { %v4061_v38 = vadd.f32 %v3418_v7, %v1027_v35 }
 0xdab   :  { %v1206_v39 = vrot.slane %v4061_v38, 4 }
 0xdad   :  { %1207 = vrot.lane.b32.xlu1 %v1206_v39, %s3686_s6 }
 0xe15   :  { %v1202_v40 = vpop.permute.xlu0 %1201 }
 0xe16   :  { %v4065_v42 = vadd.f32 %v3420_v22, %v1202_v40 }
 0xe18   :  { %1390 = vrot.lane.b32.xlu0 %v4065_v42, %s3686_s6 }
 0xe1f   :  { %v1208_v37 = vpop.permute.xlu1 %1207 }
 0xe20   :  { %3186 = vmatmul.mubr.msk.f32.vlgmr.msra.gmra.mxu0 %vm323_vm8, %v1208_v37  ;;  %3197 = vmatmul.mubr.msk.f32.vlgmr.msra.gmra.mxu1 %vm323_vm8, %v1208_v37 }
 0xe21   :  { %3200 = vmatpush3.msra.mxu0 %v3933_v26  ;;  %3207 = vmatprep.mubr.msk.f32.mxu0 %vm3685_vm9, %v3684_v5 }
 0xe22   :  { %3201 = vmatprep.subr.mxu0 %v3684_v5  ;;  %3211 = vmatpush3.msra.mxu1 %v3840_v9 }
 0xe23   :  { %3202 = vmatpush3.msra.mxu0 %v3937_v28  ;;  %3212 = vmatprep.subr.mxu1 %v3684_v5 }
 0xe24   :  { %3203 = vmatprep.subr.mxu0 %v3684_v5  ;;  %3213 = vmatpush3.msra.mxu1 %v3844_v10 }
 0xe25   :  { %3204 = vmatpush3.msra.mxu0 %v3943_v29  ;;  %3214 = vmatprep.subr.mxu1 %v3684_v5 }
 0xe26   :  { %3205 = vmatprep.subr.mxu0 %v3684_v5  ;;  %3215 = vmatpush3.msra.mxu1 %v3850_v12 }
 0xe27   :  { %3206 = vmatpush3.msra.mxu0 %v3949_v30  ;;  %3216 = vmatprep.subr.mxu1 %v3684_v5 }
 0xe28   :  { %3221 = vmatprep.subr.mxu0 %v3684_v5  ;;  %3217 = vmatpush3.msra.mxu1 %v3854_v13 }
 0xe29   :  { %3218 = vmatprep.mubr.msk.f32.mxu1 %vm3685_vm9, %v3684_v5  ;;  %3232 = vmatprep.subr.mxu1 %v3684_v5 }
 0xe8a   :  { %v1391_v43 = vpop.permute.xlu0 %1390 }
 0xe8b   :  { %2838 = vst.msk [vmem:[#allocation14 + $0x2] sm:$0x3] %vm150_vm0, %v1391_v43  ;;  %3208 = vmatmul.mubr.msk.f32.vlgmr.msra.gmra.mxu0 %vm323_vm8, %v1391_v43 }
 0xe8c   :  { %3222 = vmatpush3.msra.mxu0 %v3912_v17  ;;  %3229 = vmatprep.mubr.msk.f32.mxu0 %vm3685_vm9, %v3684_v5 }
 0xe8d   :  { %3223 = vmatprep.subr.mxu0 %v3684_v5 }
 0xe8e   :  { %3224 = vmatpush3.msra.mxu0 %v3914_v18 }
 0xe8f   :  { %3225 = vmatprep.subr.mxu0 %v3684_v5 }
 0xe90   :  { %3226 = vmatpush3.msra.mxu0 %v3918_v19 }
 0xe91   :  { %3227 = vmatprep.subr.mxu0 %v3684_v5 }
 0xe92   :  { %3228 = vmatpush3.msra.mxu0 %v3922_v20 }
 0xe93   :  { %3243 = vmatprep.subr.mxu0 %v3684_v5 }
 0xee0   :  { %v1277_v44 = vpop.f32.mrf.mxu0  ;;  %v1385_v46 = vpop.f32.mrf.mxu1 }
 0xee1   :  { %v1291_v23 = vadd.f32 %v1277_v44, %v3889_v33  ;;  %v1282_v53 = vrot.slane %v1277_v44, 2  ;;  %v1386_v63 = vadd.f32 %v1385_v46, %v3990_v48 }
 0xee2   :  { %v3187_v49 = vpop.f32.mrf.mxu0  ;;  %v3198_v50 = vpop.f32.mrf.mxu1 }
 0xee3   :  { %v1293_v51 = vrot.slane %v1291_v23, 2  ;;  %v1284_v55 = vadd.f32 %v1282_v53, %v502_v54 }
 0xee5   :  { %1294 = vrot.lane.b32.xlu1 %v1293_v51, %s3686_s6  ;;  %v2908_v11 = vmul.f32 -1.442695, %v1284_v55  ;;  %v503_v51 = vadd.f32 %v3886_v32, %v3904_v57 }
 0xee7   :  { %3421 = vpow2.f32 %v2908_v11 }
 0xef4   :  { %v3422_v14 = vpop.eup %3421 }
 0xef5   :  { %v1288_v56 = vadd.f32 1.0, %v3422_v14 }
 0xef7   :  { %3423 = vrcp.f32 %v1288_v56 }
 0xf04   :  { %v3424_v60 = vpop.eup %3423 }
 0xf4b   :  { %v1460_v58 = vpop.f32.mrf.mxu0 }
 0xf4c   :  { %v1471_v24 = vadd.f32 %v1460_v58, %v3980_v41  ;;  %v1464_v34 = vadd.f32 %v1460_v58, %v1386_v63 }
 0xf4d   :  { %v3209_v59 = vpop.f32.mrf.mxu0 }
 0xf4e   :  { %1473 = vrot.lane.b32.xlu0 %v1471_v24, %s3686_s6  ;;  %v2911_v1 = vmul.f32 -1.442695, %v1464_v34 }
 0xf50   :  { %3425 = vpow2.f32 %v2911_v1 }
 0xf57   :  { %v1295_v61 = vpop.permute.xlu1 %1294 }
 0xf58   :  { %v1297_v62 = vmul.f32 %v3424_v60, %v1295_v61 }
 0xf5a   :  { %1299 = vrot.lane.b32.xlu1 %v1297_v62, %s3686_s6 }
 0xf5d   :  { %v3426_v3 = vpop.eup %3425 }
 0xf5e   :  { %v1468_v4 = vadd.f32 1.0, %v3426_v3 }
 0xf60   :  { %3427 = vrcp.f32 %v1468_v4 }
 0xf6d   :  { %v3428_v6 = vpop.eup %3427 }
 0xfc0   :  { %v1474_v7 = vpop.permute.xlu0 %1473 }
 0xfc1   :  { %v1476_v8 = vmul.f32 %v3428_v6, %v1474_v7 }
 0xfc3   :  { %1478 = vrot.lane.b32.xlu0 %v1476_v8, %s3686_s6 }
 0xfcc   :  { %v1300_v15 = vpop.permute.xlu1 %1299 }
 0xfcd   :  { %v1302_v16 = vadd.f32 %v1300_v15, %v502_v54 }
 0xfcf   :  { %3429 = vtanh.f32 %v1302_v16 }
 0xfdc   :  { %v3430_v0 = vpop.eup %3429 }
 0xfdd   :  { %v1305_v21 = vrot.slane %v3430_v0, 2 }
 0xfdf   :  { %v1307_v22 = vsub.f32 %v4061_v38, %v1305_v21 }
 0xfe1   :  { %v1309_v27 = vrot.slane %v1307_v22, 6 }
 0xfe3   :  { %1310 = vrot.lane.b32.xlu1 %v1309_v27, %s3679_s26 }
0x1035   :  { %v1479_v31 = vpop.permute.xlu0 %1478 }
0x1036   :  { %v1481_v25 = vadd.f32 %v1479_v31, %v1386_v63 }
0x1038   :  { %3431 = vtanh.f32 %v1481_v25 }
0x1045   :  { %v3432_v36 = vpop.eup %3431 }
0x1046   :  { %v1483_v2 = vsub.f32 %v4065_v42, %v3432_v36 }
0x1048   :  { %1485 = vrot.lane.b32.xlu0 %v1483_v2, %s3679_s26 }
0x1055   :  { %v1311_v35 = vpop.permute.xlu1 %1310 }
0x1056   :  { %v1313_v39 = vmul.f32 %v3424_v60, %v1311_v35 }
0x1058   :  { %1315 = vrot.lane.b32.xlu1 %v1313_v39, %s3687_s7 }
0x10ba   :  { %v1486_v40 = vpop.permute.xlu0 %1485 }
0x10bb   :  { %v1488_v37 = vmul.f32 %v3428_v6, %v1486_v40 }
0x10bd   :  { %1490 = vrot.lane.b32.xlu0 %v1488_v37, %s3687_s7 }
0x10ca   :  { %v1316_v38 = vpop.permute.xlu1 %1315 }
0x10cb   :  { %v4120_v43 = vadd.f32 %v3430_v0, %v1316_v38 }
0x10cd   :  { %v1495_v44 = vrot.slane %v4120_v43, 6 }
0x10cf   :  { %1496 = vrot.lane.b32.xlu1 %v1495_v44, %s3686_s6 }
0x112f   :  { %v1491_v46 = vpop.permute.xlu0 %1490 }
0x1130   :  { %v4124_v23 = vadd.f32 %v3432_v36, %v1491_v46  ;;  %v4191_v46 = vld [vmem:[#allocation9 + $0x18] sm:$0xff] }
0x1132   :  { %1675 = vrot.lane.b32.xlu0 %v4124_v23, %s3686_s6 }
0x1141   :  { %v1497_v42 = vpop.permute.xlu1 %1496 }
0x1142   :  { %3219 = vmatmul.mubr.msk.f32.vlgmr.msra.gmra.mxu1 %vm323_vm8, %v1497_v42  ;;  %3230 = vmatmul.mubr.msk.f32.vlgmr.msra.gmra.mxu0 %vm323_vm8, %v1497_v42  ;;  %v4203_v42 = vld [vmem:[#allocation9 + $0x8] sm:$0xff] }
0x1143   :  { %3233 = vmatpush3.msra.mxu1 %v3933_v26  ;;  %3240 = vmatprep.mubr.msk.f32.mxu1 %vm3685_vm9, %v3684_v5 }
0x1144   :  { %3234 = vmatprep.subr.mxu1 %v3684_v5  ;;  %3244 = vmatpush3.msra.mxu0 %v3840_v9 }
0x1145   :  { %3235 = vmatpush3.msra.mxu1 %v3937_v28  ;;  %3245 = vmatprep.subr.mxu0 %v3684_v5 }
0x1146   :  { %3236 = vmatprep.subr.mxu1 %v3684_v5  ;;  %3246 = vmatpush3.msra.mxu0 %v3844_v10 }
0x1147   :  { %3237 = vmatpush3.msra.mxu1 %v3943_v29  ;;  %3247 = vmatprep.subr.mxu0 %v3684_v5 }
0x1148   :  { %3238 = vmatprep.subr.mxu1 %v3684_v5  ;;  %3248 = vmatpush3.msra.mxu0 %v3850_v12 }
0x1149   :  { %3239 = vmatpush3.msra.mxu1 %v3949_v30  ;;  %3249 = vmatprep.subr.mxu0 %v3684_v5 }
0x114a   :  { %3254 = vmatprep.subr.mxu1 %v3684_v5  ;;  %3250 = vmatpush3.msra.mxu0 %v3854_v13 }
0x114b   :  { %3251 = vmatprep.mubr.msk.f32.mxu0 %vm3685_vm9, %v3684_v5  ;;  %3265 = vmatprep.subr.mxu0 %v3684_v5 }
0x11a4   :  { %v1676_v9 = vpop.permute.xlu0 %1675 }
0x11a5   :  { %2839 = vst.msk [vmem:[#allocation14 + $0x4] sm:$0x3] %vm150_vm0, %v1676_v9  ;;  %3241 = vmatmul.mubr.msk.f32.vlgmr.msra.gmra.mxu1 %vm323_vm8, %v1676_v9  ;;  %v4209_v9 = vld [vmem:[#allocation9] sm:$0xff] }
0x11a6   :  { %3255 = vmatpush3.msra.mxu1 %v3912_v17  ;;  %3262 = vmatprep.mubr.msk.f32.mxu1 %vm3685_vm9, %v3684_v5 }
0x11a7   :  { %3256 = vmatprep.subr.mxu1 %v3684_v5 }
0x11a8   :  { %3257 = vmatpush3.msra.mxu1 %v3914_v18 }
0x11a9   :  { %3258 = vmatprep.subr.mxu1 %v3684_v5 }
0x11aa   :  { %3259 = vmatpush3.msra.mxu1 %v3918_v19 }
0x11ab   :  { %3260 = vmatprep.subr.mxu1 %v3684_v5 }
0x11ac   :  { %3261 = vmatpush3.msra.mxu1 %v3922_v20 }
0x11ad   :  { %3276 = vmatprep.subr.mxu1 %v3684_v5 }
0x1202   :  { %v1566_v10 = vpop.f32.mrf.mxu1  ;;  %v1670_v12 = vpop.f32.mrf.mxu0 }
0x1203   :  { %v1577_v13 = vadd.f32 %v1566_v10, %v3889_v33  ;;  %v1570_v53 = vadd.f32 %v1566_v10, %v503_v51  ;;  %v1671_v61 = vadd.f32 %v1670_v12, %v3990_v48 }
0x1204   :  { %v3220_v49 = vpop.f32.mrf.mxu1  ;;  %v3231_v50 = vpop.f32.mrf.mxu0 }
0x1205   :  { %1579 = vrot.lane.b32.xlu1 %v1577_v13, %s3686_s6  ;;  %v2913_v54 = vmul.f32 -1.442695, %v1570_v53 }
0x1207   :  { %3433 = vpow2.f32 %v2913_v54 }
0x1214   :  { %v3434_v55 = vpop.eup %3433 }
0x1215   :  { %v1574_v14 = vadd.f32 1.0, %v3434_v55 }
0x1217   :  { %3435 = vrcp.f32 %v1574_v14 }
0x1224   :  { %v3436_v24 = vpop.eup %3435 }
0x1265   :  { %v1745_v11 = vpop.f32.mrf.mxu1 }
0x1266   :  { %v1756_v56 = vadd.f32 %v1745_v11, %v3980_v41  ;;  %v1749_v62 = vadd.f32 %v1745_v11, %v1671_v61 }
0x1267   :  { %v3242_v58 = vpop.f32.mrf.mxu1 }
0x1268   :  { %1758 = vrot.lane.b32.xlu0 %v1756_v56, %s3686_s6  ;;  %v2916_v63 = vmul.f32 -1.442695, %v1749_v62 }
0x126a   :  { %3437 = vpow2.f32 %v2916_v63 }
0x1277   :  { %v1580_v59 = vpop.permute.xlu1 %1579  ;;  %v3438_v34 = vpop.eup %3437 }
0x1278   :  { %v1582_v60 = vmul.f32 %v3436_v24, %v1580_v59  ;;  %v1753_v1 = vadd.f32 1.0, %v3438_v34 }
0x127a   :  { %1584 = vrot.lane.b32.xlu1 %v1582_v60, %s3686_s6  ;;  %3439 = vrcp.f32 %v1753_v1 }
0x1287   :  { %v3440_v3 = vpop.eup %3439 }
0x12da   :  { %v1759_v4 = vpop.permute.xlu0 %1758 }
0x12db   :  { %v1761_v6 = vmul.f32 %v3440_v3, %v1759_v4 }
0x12dd   :  { %1763 = vrot.lane.b32.xlu0 %v1761_v6, %s3686_s6 }
0x12ec   :  { %v1585_v7 = vpop.permute.xlu1 %1584 }
0x12ed   :  { %v1587_v8 = vadd.f32 %v1585_v7, %v503_v51 }
0x12ef   :  { %3441 = vtanh.f32 %v1587_v8 }
0x12fc   :  { %v3442_v15 = vpop.eup %3441 }
0x12fd   :  { %v1590_v16 = vrot.slane %v3442_v15, 2 }
0x12ff   :  { %v1592_v0 = vsub.f32 %v4120_v43, %v1590_v16 }
0x1301   :  { %v1594_v21 = vrot.slane %v1592_v0, 6 }
0x1303   :  { %1595 = vrot.lane.b32.xlu1 %v1594_v21, %s3679_s26 }
0x134f   :  { %v1764_v22 = vpop.permute.xlu0 %1763 }
0x1350   :  { %v1766_v27 = vadd.f32 %v1764_v22, %v1671_v61 }
0x1352   :  { %3443 = vtanh.f32 %v1766_v27 }
0x135f   :  { %v3444_v31 = vpop.eup %3443 }
0x1360   :  { %v1768_v25 = vsub.f32 %v4124_v23, %v3444_v31  ;;  %v4197_v23 = vld [vmem:[#allocation9 + $0x10] sm:$0xff] }
0x1362   :  { %1770 = vrot.lane.b32.xlu0 %v1768_v25, %s3679_s26 }
0x1375   :  { %v1596_v36 = vpop.permute.xlu1 %1595 }
0x1376   :  { %v1598_v2 = vmul.f32 %v3436_v24, %v1596_v36 }
0x1378   :  { %1600 = vrot.lane.b32.xlu1 %v1598_v2, %s3687_s7 }
0x13d4   :  { %v1771_v35 = vpop.permute.xlu0 %1770 }
0x13d5   :  { %v1773_v39 = vmul.f32 %v3440_v3, %v1771_v35 }
0x13d7   :  { %1775 = vrot.lane.b32.xlu0 %v1773_v39, %s3687_s7 }
0x13ea   :  { %v1601_v40 = vpop.permute.xlu1 %1600 }
0x13eb   :  { %v4177_v37 = vadd.f32 %v3442_v15, %v1601_v40 }
0x13ed   :  { %1780 = vrot.lane.b32.xlu1 %v4177_v37, %s3686_s6 }
0x1449   :  { %v1776_v38 = vpop.permute.xlu0 %1775 }
0x144a   :  { %v4181_v43 = vadd.f32 %v3444_v31, %v1776_v38 }
0x144c   :  { %1963 = vrot.lane.b32.xlu0 %v4181_v43, %s3686_s6 }
0x145f   :  { %v1781_v44 = vpop.permute.xlu1 %1780 }
0x1460   :  { %3252 = vmatmul.mubr.msk.f32.vlgmr.msra.gmra.mxu0 %vm323_vm8, %v1781_v44  ;;  %3263 = vmatmul.mubr.msk.f32.vlgmr.msra.gmra.mxu1 %vm323_vm8, %v1781_v44  ;;  %v4289_v44 = vld [vmem:[#allocation11] sm:$0xff] }
0x1461   :  { %3266 = vmatpush3.msra.mxu0 %v3933_v26  ;;  %3273 = vmatprep.mubr.msk.f32.mxu0 %vm3685_vm9, %v3684_v5 }
0x1462   :  { %3267 = vmatprep.subr.mxu0 %v3684_v5  ;;  %3277 = vmatpush3.msra.mxu1 %v4191_v46 }
0x1463   :  { %3268 = vmatpush3.msra.mxu0 %v3937_v28  ;;  %3278 = vmatprep.subr.mxu1 %v3684_v5 }
0x1464   :  { %3269 = vmatprep.subr.mxu0 %v3684_v5  ;;  %3279 = vmatpush3.msra.mxu1 %v4197_v23 }
0x1465   :  { %3270 = vmatpush3.msra.mxu0 %v3943_v29  ;;  %3280 = vmatprep.subr.mxu1 %v3684_v5 }
0x1466   :  { %3271 = vmatprep.subr.mxu0 %v3684_v5  ;;  %3281 = vmatpush3.msra.mxu1 %v4203_v42 }
0x1467   :  { %3272 = vmatpush3.msra.mxu0 %v3949_v30  ;;  %3282 = vmatprep.subr.mxu1 %v3684_v5 }
0x1468   :  { %3287 = vmatprep.subr.mxu0 %v3684_v5  ;;  %3283 = vmatpush3.msra.mxu1 %v4209_v9 }
0x1469   :  { %3284 = vmatprep.mubr.msk.f32.mxu1 %vm3685_vm9, %v3684_v5  ;;  %3298 = vmatprep.subr.mxu1 %v3684_v5 }
0x14be   :  { %v1964_v10 = vpop.permute.xlu0 %1963 }
0x14bf   :  { %2840 = vst.msk [vmem:[#allocation14 + $0x6] sm:$0x3] %vm150_vm0, %v1964_v10  ;;  %3274 = vmatmul.mubr.msk.f32.vlgmr.msra.gmra.mxu0 %vm323_vm8, %v1964_v10 }
0x14c0   :  { %3288 = vmatpush3.msra.mxu0 %v3912_v17  ;;  %3295 = vmatprep.mubr.msk.f32.mxu0 %vm3685_vm9, %v3684_v5 }
0x14c1   :  { %3289 = vmatprep.subr.mxu0 %v3684_v5 }
0x14c2   :  { %3290 = vmatpush3.msra.mxu0 %v3914_v18 }
0x14c3   :  { %3291 = vmatprep.subr.mxu0 %v3684_v5 }
0x14c4   :  { %3292 = vmatpush3.msra.mxu0 %v3918_v19  ;;  %v504_v19 = vadd.f32 %v3886_v32, %v494_v45 }
0x14c5   :  { %3293 = vmatprep.subr.mxu0 %v3684_v5 }
0x14c6   :  { %3294 = vmatpush3.msra.mxu0 %v3922_v20 }
0x14c7   :  { %3309 = vmatprep.subr.mxu0 %v3684_v5 }
0x1520   :  { %v1850_v12 = vpop.f32.mrf.mxu0  ;;  %v1958_v13 = vpop.f32.mrf.mxu1 }
0x1521   :  { %v1864_v17 = vadd.f32 %v1850_v12, %v3889_v33  ;;  %v1855_v18 = vrot.slane %v1850_v12, 6  ;;  %v1959_v60 = vadd.f32 %v1958_v13, %v3990_v48 }
0x1522   :  { %v3253_v49 = vpop.f32.mrf.mxu0  ;;  %v3264_v50 = vpop.f32.mrf.mxu1 }
0x1523   :  { %v1866_v51 = vrot.slane %v1864_v17, 6  ;;  %v1857_v53 = vadd.f32 %v1855_v18, %v504_v19  ;;  %v505_v17 = vadd.f32 %v3886_v32, %v497_v47 }
0x1525   :  { %1867 = vrot.lane.b32.xlu1 %v1866_v51, %s3686_s6  ;;  %v2918_v54 = vmul.f32 -1.442695, %v1857_v53 }
0x1527   :  { %3445 = vpow2.f32 %v2918_v54 }
0x1534   :  { %v3446_v14 = vpop.eup %3445 }
0x1535   :  { %v1861_v56 = vadd.f32 1.0, %v3446_v14 }
0x1537   :  { %3447 = vrcp.f32 %v1861_v56 }
0x1544   :  { %v3448_v58 = vpop.eup %3447 }
0x157f   :  { %v2033_v20 = vpop.f32.mrf.mxu0 }
0x1580   :  { %v2044_v55 = vadd.f32 %v2033_v20, %v3980_v41  ;;  %v2037_v45 = vadd.f32 %v2033_v20, %v1959_v60 }
0x1581   :  { %v3275_v11 = vpop.f32.mrf.mxu0 }
0x1582   :  { %2046 = vrot.lane.b32.xlu0 %v2044_v55, %s3686_s6  ;;  %v2921_v61 = vmul.f32 -1.442695, %v2037_v45 }
0x1584   :  { %3449 = vpow2.f32 %v2921_v61 }
0x1591   :  { %v3450_v62 = vpop.eup %3449 }
0x1592   :  { %v2041_v63 = vadd.f32 1.0, %v3450_v62 }
0x1594   :  { %3451 = vrcp.f32 %v2041_v63 }
0x1597   :  { %v1868_v24 = vpop.permute.xlu1 %1867 }
0x1598   :  { %v1870_v59 = vmul.f32 %v3448_v58, %v1868_v24 }
0x159a   :  { %1872 = vrot.lane.b32.xlu1 %v1870_v59, %s3686_s6 }
0x15a1   :  { %v3452_v34 = vpop.eup %3451 }
0x15f4   :  { %v2047_v1 = vpop.permute.xlu0 %2046 }
0x15f5   :  { %v2049_v3 = vmul.f32 %v3452_v34, %v2047_v1 }
0x15f7   :  { %2051 = vrot.lane.b32.xlu0 %v2049_v3, %s3686_s6 }
0x160c   :  { %v1873_v4 = vpop.permute.xlu1 %1872 }
0x160d   :  { %v1875_v6 = vadd.f32 %v1873_v4, %v504_v19 }
0x160f   :  { %3453 = vtanh.f32 %v1875_v6 }
0x161c   :  { %v3454_v7 = vpop.eup %3453 }
0x161d   :  { %v1878_v8 = vrot.slane %v3454_v7, 2 }
0x161f   :  { %v1880_v15 = vsub.f32 %v4177_v37, %v1878_v8 }
0x1621   :  { %v1882_v16 = vrot.slane %v1880_v15, 6 }
0x1623   :  { %1883 = vrot.lane.b32.xlu1 %v1882_v16, %s3679_s26 }
0x1669   :  { %v2052_v0 = vpop.permute.xlu0 %2051 }
0x166a   :  { %v2054_v21 = vadd.f32 %v2052_v0, %v1959_v60 }
0x166c   :  { %3455 = vtanh.f32 %v2054_v21 }
0x1679   :  { %v3456_v22 = vpop.eup %3455 }
0x167a   :  { %v2056_v27 = vsub.f32 %v4181_v43, %v3456_v22 }
0x167c   :  { %2058 = vrot.lane.b32.xlu0 %v2056_v27, %s3679_s26 }
0x1695   :  { %v1884_v31 = vpop.permute.xlu1 %1883 }
0x1696   :  { %v1886_v25 = vmul.f32 %v3448_v58, %v1884_v31 }
0x1698   :  { %1888 = vrot.lane.b32.xlu1 %v1886_v25, %s3687_s7 }
0x16ee   :  { %v2059_v36 = vpop.permute.xlu0 %2058 }
0x16ef   :  { %v2061_v2 = vmul.f32 %v3452_v34, %v2059_v36 }
0x16f1   :  { %2063 = vrot.lane.b32.xlu0 %v2061_v2, %s3687_s7 }
0x170a   :  { %v1889_v35 = vpop.permute.xlu1 %1888 }
0x170b   :  { %v4243_v39 = vadd.f32 %v3454_v7, %v1889_v35  ;;  %v3495_v35 = vld [vmem:[#allocation12 + $0x18] sm:$0xff] }
0x170d   :  { %v2068_v40 = vrot.slane %v4243_v39, 2 }
0x170f   :  { %2069 = vrot.lane.b32.xlu1 %v2068_v40, %s3686_s6  ;;  %v3497_v40 = vld [vmem:[#allocation12 + $0x8] sm:$0xff] }
0x1763   :  { %v2064_v37 = vpop.permute.xlu0 %2063 }
0x1764   :  { %v4247_v38 = vadd.f32 %v3456_v22, %v2064_v37  ;;  %v3498_v37 = vld [vmem:[#allocation12] sm:$0xff] }
0x1766   :  { %2252 = vrot.lane.b32.xlu0 %v4247_v38, %s3686_s6 }
0x1781   :  { %v2070_v43 = vpop.permute.xlu1 %2069 }
0x1782   :  { %3285 = vmatmul.mubr.msk.f32.vlgmr.msra.gmra.mxu1 %vm323_vm8, %v2070_v43  ;;  %3296 = vmatmul.mubr.msk.f32.vlgmr.msra.gmra.mxu0 %vm323_vm8, %v2070_v43 }
0x1783   :  { %3299 = vmatpush3.msra.mxu1 %v3933_v26  ;;  %3306 = vmatprep.mubr.msk.f32.mxu1 %vm3685_vm9, %v3684_v5 }
0x1784   :  { %3300 = vmatprep.subr.mxu1 %v3684_v5  ;;  %3310 = vmatpush3.msra.mxu0 %v4191_v46 }
0x1785   :  { %3301 = vmatpush3.msra.mxu1 %v3937_v28  ;;  %3311 = vmatprep.subr.mxu0 %v3684_v5  ;;  %v4275_v28 = vld [vmem:[#allocation11 + $0x18] sm:$0xff] }
0x1786   :  { %3302 = vmatprep.subr.mxu1 %v3684_v5  ;;  %3312 = vmatpush3.msra.mxu0 %v4197_v23 }
0x1787   :  { %3303 = vmatpush3.msra.mxu1 %v3943_v29  ;;  %3313 = vmatprep.subr.mxu0 %v3684_v5  ;;  %v4281_v29 = vld [vmem:[#allocation11 + $0x10] sm:$0xff] }
0x1788   :  { %3304 = vmatprep.subr.mxu1 %v3684_v5  ;;  %3314 = vmatpush3.msra.mxu0 %v4203_v42 }
0x1789   :  { %3305 = vmatpush3.msra.mxu1 %v3949_v30  ;;  %3315 = vmatprep.subr.mxu0 %v3684_v5  ;;  %v4285_v30 = vld [vmem:[#allocation11 + $0x8] sm:$0xff] }
0x178a   :  { %3320 = vmatprep.subr.mxu1 %v3684_v5  ;;  %3316 = vmatpush3.msra.mxu0 %v4209_v9 }
0x178b   :  { %3317 = vmatprep.mubr.msk.f32.mxu0 %vm3685_vm9, %v3684_v5  ;;  %3331 = vmatprep.subr.mxu0 %v3684_v5 }
0x17d8   :  { %v2253_v26 = vpop.permute.xlu0 %2252 }
0x17d9   :  { %2841 = vst.msk [vmem:[#allocation14 + $0x8] sm:$0x3] %vm150_vm0, %v2253_v26  ;;  %3307 = vmatmul.mubr.msk.f32.vlgmr.msra.gmra.mxu1 %vm323_vm8, %v2253_v26 }
0x17da   :  { %3321 = vmatpush3.msra.mxu1 %v4275_v28  ;;  %3328 = vmatprep.mubr.msk.f32.mxu1 %vm3685_vm9, %v3684_v5 }
0x17db   :  { %3322 = vmatprep.subr.mxu1 %v3684_v5 }
0x17dc   :  { %3323 = vmatpush3.msra.mxu1 %v4281_v29 }
0x17dd   :  { %3324 = vmatprep.subr.mxu1 %v3684_v5 }
0x17de   :  { %3325 = vmatpush3.msra.mxu1 %v4285_v30 }
0x17df   :  { %3326 = vmatprep.subr.mxu1 %v3684_v5 }
0x17e0   :  { %3327 = vmatpush3.msra.mxu1 %v4289_v44 }
0x17e1   :  { %3342 = vmatprep.subr.mxu1 %v3684_v5 }
0x1842   :  { %v2139_v46 = vpop.f32.mrf.mxu1  ;;  %v2247_v23 = vpop.f32.mrf.mxu0 }
0x1843   :  { %v2153_v42 = vadd.f32 %v2139_v46, %v3889_v33  ;;  %v2144_v13 = vrot.slane %v2139_v46, 4  ;;  %v2248_v14 = vadd.f32 %v2247_v23, %v3990_v48  ;;  %v506_v23 = vadd.f32 %v3886_v32, %v500_v52 }
0x1844   :  { %v3286_v9 = vpop.f32.mrf.mxu1  ;;  %v3297_v10 = vpop.f32.mrf.mxu0 }
0x1845   :  { %v2155_v12 = vrot.slane %v2153_v42, 4  ;;  %v2146_v49 = vadd.f32 %v2144_v13, %v505_v17 }
0x1847   :  { %2156 = vrot.lane.b32.xlu1 %v2155_v12, %s3686_s6  ;;  %v2923_v50 = vmul.f32 -1.442695, %v2146_v49 }
0x1849   :  { %3457 = vpow2.f32 %v2923_v50 }
0x1856   :  { %v3458_v53 = vpop.eup %3457 }
0x1857   :  { %v2150_v54 = vadd.f32 1.0, %v3458_v53 }
0x1859   :  { %3459 = vrcp.f32 %v2150_v54 }
0x1866   :  { %v3460_v20 = vpop.eup %3459 }
0x1899   :  { %v2322_v51 = vpop.f32.mrf.mxu1 }
0x189a   :  { %v2333_v18 = vadd.f32 %v2322_v51, %v3980_v41  ;;  %v2326_v47 = vadd.f32 %v2322_v51, %v2248_v14 }
0x189b   :  { %v3308_v19 = vpop.f32.mrf.mxu1 }
0x189c   :  { %2335 = vrot.lane.b32.xlu0 %v2333_v18, %s3686_s6  ;;  %v2926_v56 = vmul.f32 -1.442695, %v2326_v47 }
0x189e   :  { %3461 = vpow2.f32 %v2926_v56 }
0x18ab   :  { %v3462_v58 = vpop.eup %3461 }
0x18ac   :  { %v2330_v24 = vadd.f32 1.0, %v3462_v58 }
0x18ae   :  { %3463 = vrcp.f32 %v2330_v24 }
0x18b9   :  { %v2157_v55 = vpop.permute.xlu1 %2156 }
0x18ba   :  { %v2159_v11 = vmul.f32 %v3460_v20, %v2157_v55 }
0x18bb   :  { %v3464_v59 = vpop.eup %3463 }
0x18bc   :  { %2161 = vrot.lane.b32.xlu1 %v2159_v11, %s3686_s6 }
0x190e   :  { %v2336_v60 = vpop.permute.xlu0 %2335 }
0x190f   :  { %v2338_v45 = vmul.f32 %v3464_v59, %v2336_v60 }
0x1911   :  { %2340 = vrot.lane.b32.xlu0 %v2338_v45, %s3686_s6 }
0x192e   :  { %v2162_v61 = vpop.permute.xlu1 %2161 }
0x192f   :  { %v2164_v62 = vadd.f32 %v2162_v61, %v505_v17 }
0x1931   :  { %3465 = vtanh.f32 %v2164_v62 }
0x193e   :  { %v3466_v63 = vpop.eup %3465 }
0x193f   :  { %v2167_v34 = vrot.slane %v3466_v63, 2 }
0x1941   :  { %v2169_v1 = vsub.f32 %v4243_v39, %v2167_v34  ;;  %v3496_v39 = vld [vmem:[#allocation12 + $0x10] sm:$0xff] }
0x1943   :  { %v2171_v3 = vrot.slane %v2169_v1, 6 }
0x1945   :  { %2172 = vrot.lane.b32.xlu1 %v2171_v3, %s3679_s26 }
0x1983   :  { %v2341_v4 = vpop.permute.xlu0 %2340 }
0x1984   :  { %v2343_v6 = vadd.f32 %v2341_v4, %v2248_v14 }
0x1986   :  { %3467 = vtanh.f32 %v2343_v6 }
0x1993   :  { %v3468_v7 = vpop.eup %3467 }
0x1994   :  { %v2345_v8 = vsub.f32 %v4247_v38, %v3468_v7 }
0x1996   :  { %2347 = vrot.lane.b32.xlu0 %v2345_v8, %s3679_s26 }
0x19b7   :  { %v2173_v15 = vpop.permute.xlu1 %2172 }
0x19b8   :  { %v2175_v16 = vmul.f32 %v3460_v20, %v2173_v15 }
0x19ba   :  { %2177 = vrot.lane.b32.xlu1 %v2175_v16, %s3687_s7 }
0x1a08   :  { %v2348_v0 = vpop.permute.xlu0 %2347 }
0x1a09   :  { %v2350_v21 = vmul.f32 %v3464_v59, %v2348_v0 }
0x1a0b   :  { %2352 = vrot.lane.b32.xlu0 %v2350_v21, %s3687_s7 }
0x1a2c   :  { %v2178_v22 = vpop.permute.xlu1 %2177 }
0x1a2d   :  { %v4309_v27 = vadd.f32 %v3466_v63, %v2178_v22 }
0x1a2f   :  { %v2357_v31 = vrot.slane %v4309_v27, 4 }
0x1a31   :  { %2358 = vrot.lane.b32.xlu1 %v2357_v31, %s3686_s6 }
0x1a7d   :  { %v2353_v25 = vpop.permute.xlu0 %2352 }
0x1a7e   :  { %v4313_v36 = vadd.f32 %v3468_v7, %v2353_v25 }
0x1a80   :  { %2541 = vrot.lane.b32.xlu0 %v4313_v36, %s3686_s6 }
0x1aa3   :  { %v2359_v2 = vpop.permute.xlu1 %2358 }
0x1aa4   :  { %3318 = vmatmul.mubr.msk.f32.vlgmr.msra.gmra.mxu0 %vm323_vm8, %v2359_v2  ;;  %3329 = vmatmul.mubr.msk.f32.vlgmr.msra.gmra.mxu1 %vm323_vm8, %v2359_v2 }
0x1aa5   :  { %3332 = vmatpush3.msra.mxu0 %v3495_v35  ;;  %3339 = vmatprep.mubr.msk.f32.mxu0 %vm3685_vm9, %v3684_v5 }
0x1aa6   :  { %3333 = vmatprep.subr.mxu0 %v3684_v5  ;;  %3343 = vmatpush3.msra.mxu1 %v4275_v28 }
0x1aa7   :  { %3334 = vmatpush3.msra.mxu0 %v3496_v39  ;;  %3344 = vmatprep.subr.mxu1 %v3684_v5 }
0x1aa8   :  { %3335 = vmatprep.subr.mxu0 %v3684_v5  ;;  %3345 = vmatpush3.msra.mxu1 %v4281_v29 }
0x1aa9   :  { %3336 = vmatpush3.msra.mxu0 %v3497_v40  ;;  %3346 = vmatprep.subr.mxu1 %v3684_v5 }
0x1aaa   :  { %3337 = vmatprep.subr.mxu0 %v3684_v5  ;;  %3347 = vmatpush3.msra.mxu1 %v4285_v30 }
0x1aab   :  { %3338 = vmatpush3.msra.mxu0 %v3498_v37  ;;  %3348 = vmatprep.subr.mxu1 %v3684_v5 }
0x1aac   :  { %3349 = vmatpush3.msra.mxu1 %v4289_v44  ;;  %3350 = vmatprep.mubr.msk.f32.mxu1 %vm3685_vm9, %v3684_v5 }
0x1aad   :  { %3353 = vmatprep.subr.mxu0 %v3684_v5 }
0x1af2   :  { %v2542_v38 = vpop.permute.xlu0 %2541 }
0x1af3   :  { %2842 = vst.msk [vmem:[#allocation14 + $0xa] sm:$0x3] %vm150_vm0, %v2542_v38  ;;  %3340 = vmatmul.mubr.msk.f32.vlgmr.msra.gmra.mxu0 %vm323_vm8, %v2542_v38 }
0x1af4   :  { %3354 = vmatpush3.msra.mxu0 %v3495_v35  ;;  %3361 = vmatprep.mubr.msk.f32.mxu0 %vm3685_vm9, %v3684_v5 }
0x1af5   :  { %3355 = vmatprep.subr.mxu0 %v3684_v5 }
0x1af6   :  { %3356 = vmatpush3.msra.mxu0 %v3496_v39 }
0x1af7   :  { %3357 = vmatprep.subr.mxu0 %v3684_v5 }
0x1af8   :  { %3358 = vmatpush3.msra.mxu0 %v3497_v40 }
0x1af9   :  { %3359 = vmatprep.subr.mxu0 %v3684_v5 }
0x1afa   :  { %3360 = vmatpush3.msra.mxu0 %v3498_v37 }
0x1b64   :  { %v2428_v43 = vpop.f32.mrf.mxu0  ;;  %v2536_v26 = vpop.f32.mrf.mxu1 }
0x1b65   :  { %v2442_v28 = vadd.f32 %v2428_v43, %v3889_v33  ;;  %v2433_v46 = vrot.slane %v2428_v43, 2  ;;  %v2537_v57 = vadd.f32 %v2536_v26, %v3990_v48 }
0x1b66   :  { %v3319_v29 = vpop.f32.mrf.mxu0  ;;  %v3330_v30 = vpop.f32.mrf.mxu1 }
0x1b67   :  { %v2444_v44 = vrot.slane %v2442_v28, 2  ;;  %v2435_v42 = vadd.f32 %v2433_v46, %v506_v23 }
0x1b69   :  { %2445 = vrot.lane.b32.xlu0 %v2444_v44, %s3686_s6  ;;  %v2928_v12 = vmul.f32 -1.442695, %v2435_v42 }
0x1b6b   :  { %3469 = vpow2.f32 %v2928_v12 }
0x1b78   :  { %v3470_v33 = vpop.eup %3469 }
0x1b79   :  { %v2439_v13 = vadd.f32 1.0, %v3470_v33 }
0x1b7b   :  { %3471 = vrcp.f32 %v2439_v13 }
0x1b88   :  { %v3472_v17 = vpop.eup %3471 }
0x1bb3   :  { %v2611_v9 = vpop.f32.mrf.mxu0 }
0x1bb4   :  { %v2622_v10 = vadd.f32 %v2611_v9, %v3980_v41  ;;  %v2615_v32 = vadd.f32 %v2611_v9, %v2537_v57 }
0x1bb5   :  { %v3341_v5 = vpop.f32.mrf.mxu0 }
0x1bb6   :  { %2624 = vrot.lane.b32.xlu1 %v2622_v10, %s3686_s6  ;;  %v2931_v52 = vmul.f32 -1.442695, %v2615_v32 }
0x1bb8   :  { %3473 = vpow2.f32 %v2931_v52 }
0x1bc5   :  { %v3474_v51 = vpop.eup %3473 }
0x1bc6   :  { %v2619_v18 = vadd.f32 1.0, %v3474_v51 }
0x1bc8   :  { %3475 = vrcp.f32 %v2619_v18 }
0x1bd5   :  { %v3476_v19 = vpop.eup %3475 }
0x1bdb   :  { %v2446_v49 = vpop.permute.xlu0 %2445 }
0x1bdc   :  { %v2448_v50 = vmul.f32 %v3472_v17, %v2446_v49 }
0x1bde   :  { %2450 = vrot.lane.b32.xlu0 %v2448_v50, %s3686_s6 }
0x1c28   :  { %v2625_v53 = vpop.permute.xlu1 %2624 }
0x1c29   :  { %v2627_v54 = vmul.f32 %v3476_v19, %v2625_v53 }
0x1c2b   :  { %2629 = vrot.lane.b32.xlu1 %v2627_v54, %s3686_s6 }
0x1c50   :  { %v2451_v20 = vpop.permute.xlu0 %2450 }
0x1c51   :  { %v2453_v55 = vadd.f32 %v2451_v20, %v506_v23 }
0x1c53   :  { %3477 = vtanh.f32 %v2453_v55 }
0x1c60   :  { %v3478_v11 = vpop.eup %3477 }
0x1c61   :  { %v2456_v14 = vrot.slane %v3478_v11, 2 }
0x1c63   :  { %v2458_v47 = vsub.f32 %v4309_v27, %v2456_v14 }
0x1c65   :  { %v2460_v56 = vrot.slane %v2458_v47, 6 }
0x1c67   :  { %2461 = vrot.lane.b32.xlu0 %v2460_v56, %s3679_s26 }
0x1c9d   :  { %v2630_v58 = vpop.permute.xlu1 %2629 }
0x1c9e   :  { %v2632_v24 = vadd.f32 %v2630_v58, %v2537_v57 }
0x1ca0   :  { %3479 = vtanh.f32 %v2632_v24 }
0x1cad   :  { %v3480_v59 = vpop.eup %3479 }
0x1cae   :  { %v2634_v60 = vsub.f32 %v4313_v36, %v3480_v59 }
0x1cb0   :  { %2636 = vrot.lane.b32.xlu1 %v2634_v60, %s3679_s26 }
0x1cd9   :  { %v2462_v45 = vpop.permute.xlu0 %2461 }
0x1cda   :  { %v2464_v61 = vmul.f32 %v3472_v17, %v2462_v45 }
0x1cdc   :  { %2466 = vrot.lane.b32.xlu0 %v2464_v61, %s3687_s7 }
0x1d22   :  { %v2637_v62 = vpop.permute.xlu1 %2636 }
0x1d23   :  { %v2639_v63 = vmul.f32 %v3476_v19, %v2637_v62 }
0x1d25   :  { %2641 = vrot.lane.b32.xlu1 %v2639_v63, %s3687_s7 }
0x1d4e   :  { %v2467_v34 = vpop.permute.xlu0 %2466 }
0x1d4f   :  { %v2469_v1 = vadd.f32 %v3478_v11, %v2467_v34 }
0x1d51   :  { %v2646_v3 = vrot.slane %v2469_v1, 6 }
0x1d53   :  { %2647 = vrot.lane.b32.xlu0 %v2646_v3, %s3686_s6 }
0x1d97   :  { %v2642_v4 = vpop.permute.xlu1 %2641 }
0x1d98   :  { %v2644_v6 = vadd.f32 %v3480_v59, %v2642_v4 }
0x1d9a   :  { %2722 = vrot.lane.b32.xlu1 %v2644_v6, %s3686_s6 }
0x1dc5   :  { %v2648_v7 = vpop.permute.xlu0 %2647 }
0x1dc6   :  { %3351 = vmatmul.mubr.msk.f32.vlgmr.msra.gmra.mxu1 %vm323_vm8, %v2648_v7 }
0x1e0c   :  { %v2723_v8 = vpop.permute.xlu1 %2722 }
0x1e0d   :  { %2843 = vst.msk [vmem:[#allocation14 + $0xc] sm:$0x3] %vm150_vm0, %v2723_v8  ;;  %3362 = vmatmul.mubr.msk.f32.vlgmr.msra.gmra.mxu0 %vm323_vm8, %v2723_v8 }
0x1e86   :  { %v2717_v15 = vpop.f32.mrf.mxu1 }
0x1e87   :  { %v2718_v27 = vadd.f32 %v2717_v15, %v3990_v48 }
0x1e88   :  { %v3352_v16 = vpop.f32.mrf.mxu1 }
0x1ecd   :  { %v2792_v0 = vpop.f32.mrf.mxu0 }
0x1ece   :  { %v2803_v21 = vadd.f32 %v2792_v0, %v3980_v41  ;;  %v2796_v31 = vadd.f32 %v2792_v0, %v2718_v27 }
0x1ecf   :  { %v3363_v22 = vpop.f32.mrf.mxu0 }
0x1ed0   :  { %2805 = vrot.lane.b32.xlu1 %v2803_v21, %s3686_s6  ;;  %v2934_v25 = vmul.f32 -1.442695, %v2796_v31 }
0x1ed2   :  { %3481 = vpow2.f32 %v2934_v25 }
0x1edf   :  { %v3482_v36 = vpop.eup %3481 }
0x1ee0   :  { %v2800_v2 = vadd.f32 1.0, %v3482_v36 }
0x1ee2   :  { %3483 = vrcp.f32 %v2800_v2 }
0x1eef   :  { %v3484_v35 = vpop.eup %3483 }
0x1f42   :  { %v2806_v39 = vpop.permute.xlu1 %2805 }
0x1f43   :  { %v2808_v40 = vmul.f32 %v3484_v35, %v2806_v39 }
0x1f45   :  { %2810 = vrot.lane.b32.xlu0 %v2808_v40, %s3686_s6 }
0x1fb7   :  { %v2811_v37 = vpop.permute.xlu0 %2810 }
0x1fb8   :  { %v2813_v38 = vadd.f32 %v2811_v37, %v2718_v27 }
0x1fba   :  { %3485 = vtanh.f32 %v2813_v38 }
0x1fc7   :  { %v3486_v41 = vpop.eup %3485 }
0x1fc8   :  { %v2815_v43 = vsub.f32 %v2644_v6, %v3486_v41 }
0x1fca   :  { %2817 = vrot.lane.b32.xlu1 %v2815_v43, %s3679_s26 }
0x203c   :  { %v2818_v26 = vpop.permute.xlu1 %2817 }
0x203d   :  { %v2820_v48 = vmul.f32 %v3484_v35, %v2818_v26 }
0x203f   :  { %2822 = vrot.lane.b32.xlu0 %v2820_v48, %s3687_s7 }
0x2043   :  { %2846 = vrot.lane.b32.xlu0 %v2469_v1, %s3686_s6 }
0x20b1   :  { %v2823_v28 = vpop.permute.xlu0 %2822 }
0x20b2   :  { %v2825_v29 = vadd.f32 %v3486_v41, %v2823_v28 }
0x20b4   :  { %2827 = vrot.lane.b32.xlu1 %v2825_v29, %s3686_s6  ;;  %v2845_v44 = vrot.slane %v2825_v29, 2 }
0x20b5   :  { %v2847_v30 = vpop.permute.xlu0 %2846 }
0x20b6   :  { %2853 = vst.msk [vmem:[#allocation15 - $0x6] sm:$0xc0] %vm2852_vm10, %v2847_v30 }
0x20b8   :  { %2848 = vrot.lane.b32.xlu1 %v2845_v44, %s3686_s6 }
0x2126   :  { %v2828_v46 = vpop.permute.xlu1 %2827 }
0x2127   :  { %2844 = vst.msk [vmem:[#allocation14 + $0xe] sm:$0x3] %vm150_vm0, %v2828_v46 }
0x2128   :  { %3630 = shalt.err (!%p3627_p6)
}
0x2129   :  { %2866 = dma.vmem_to_hbm [thread:$0]  %s2861_s23, 256, %s4397_s11, [#allocation5], %s3687_s7, %s3687_s7, %s3681_s2  }
0x212a   :  { %v2849_v23 = vpop.permute.xlu1 %2848  ;;  %s3639_s30 = scalar_lea.vmem %s2873_s25, 64  ;;  %p3644_p8 = scmp.lt.s32.totalorder %s2873_s25, %s2873_s25 }
0x212b   :  { %2854 = vst.msk [vmem:[#allocation15 - $0x4] sm:$0xc0] %vm2852_vm10, %v2849_v23  ;;  %p3640_p7 = scmp.ne.s32.totalorder %s2873_s25, %s3639_s30  ;;  %p3645_p9 = scmp.lt.s32.totalorder %s3639_s30, %s3639_s30 }
0x212d   :  { %p3646_p10 = por %p3645_p9, %p3644_p8 }
0x212f   :  { %p3647_p11 = pnand %p3646_p10, %p3640_p7 }
0x2131   :  { %3650 = shalt.err (!%p3647_p11)
}
0x2132   :  { %2878 = dma.vmem_to_hbm [thread:$0]  %s2873_s25, 64, %s4398_s12, [#allocation16], %s3687_s7, %s3687_s7, %s3681_s2  }
0x2133   :  { %3667 = dma.done.wait [#allocation5], 256  }
0x2134   :  { %3668 = vsyncadd [#allocation5], 4294967040 }
0x2135   :  { %3669 = dma.done.wait [#allocation16], 64  }
0x2136   :  { %3670 = vsyncadd [#allocation16], 4294967232 }
0x2137   :  { %2885 = vsyncpa [#allocation4], 1 }
0x2138   :  { %2886 = vsyncpa [#allocation7], 1 }
0x2139   :  { %2887 = vsyncpa [#allocation10], 1 }
0x213a   :  { %2888 = vsyncpa [#allocation13], 1 }
0x213b   :  { %2889 = vsyncpa [#allocation5], 1 }
0x213c   :  { %2890 = vsyncpa [#allocation16], 1 }

</bundles_post_ra>
